<compile_context>
chip_gen: v5e
topology: v5e:2x2
jax: 0.10.0
libtpu: 0.0.40
codegen_flags: <defaults>
</compile_context>

<pallas_src>
import jax
import jax.numpy as jnp
from jax.experimental import pallas as pl
from jax.experimental.pallas import tpu as pltpu


# --------------------------------------------------------------------------- #
# Fused forward kernel: GCN layers -> aggregation -> MLP, one batch block per step.
# --------------------------------------------------------------------------- #
def _make_fused_kernel(n_gcn, n_mlp, edge_type_num, vertexes, b_blk, m_dim,
                       gcn_units, aux_dim):
    E, V = edge_type_num, vertexes

    def kernel(*refs):
        idx = 0
        node_ref = refs[idx]; idx += 1
        adj_ref = refs[idx]; idx += 1
        gcn_w = []
        for l in range(n_gcn):
            if l == 0:
                gcn_w.append((refs[idx], None, refs[idx + 1])); idx += 2
            else:
                gcn_w.append((refs[idx], refs[idx + 1], refs[idx + 2])); idx += 3
        w_ij_h, w_ij_n, b_ij = refs[idx], refs[idx + 1], refs[idx + 2]; idx += 3
        mlp_w = []
        for _ in range(n_mlp):
            mlp_w.append((refs[idx], refs[idx + 1])); idx += 2
        o_ref = refs[idx]

        # (B_blk, V, m) -> (B_blk*V, m) : fold graphs into the matmul M dimension.
        node2d = node_ref[...].reshape(b_blk * V, m_dim).astype(jnp.bfloat16)

        h_bf = None                      # previous layer activation, bf16, (B_blk*V, U)
        for l in range(n_gcn):
            w_n, w_h, b_cat = gcn_w[l]
            U = gcn_units[l]
            # One wide matmul over the (E+1)*U concatenated outputs (fills MXU N).
            lin = jnp.dot(node2d, w_n[...], preferred_element_type=jnp.float32)
            if h_bf is not None:
                lin = lin + jnp.dot(h_bf, w_h[...], preferred_element_type=jnp.float32)
            lin = lin + b_cat[...]                      # (B_blk*V, (E+1)*U) f32
            skip = lin[:, E * U:]                       # linear_2 skip path, f32
            lin_e = lin[:, :E * U].astype(jnp.bfloat16)  # per-edge operand, one cast
            parts = []
            for g in range(b_blk):                      # tiny static loops (B_blk*E)
                conv_g = skip[g * V:(g + 1) * V, :]
                for e in range(E):
                    a_ge = adj_ref[g, e]                # (V, V) bf16, 0/1 exact
                    l_ge = lin_e[g * V:(g + 1) * V, e * U:(e + 1) * U]
                    conv_g = conv_g + jnp.dot(a_ge, l_ge,
                                              preferred_element_type=jnp.float32)
                parts.append(jnp.tanh(conv_g))          # Dropout(0.0) == identity
            h_bf = jnp.concatenate(parts, axis=0).astype(jnp.bfloat16)

        # GraphAggregation: ann = [node, h]; i/j linears fused along N (2*aux wide).
        ij = (jnp.dot(h_bf, w_ij_h[...], preferred_element_type=jnp.float32)
              + jnp.dot(node2d, w_ij_n[...], preferred_element_type=jnp.float32)
              + b_ij[...])                              # (B_blk*V, 2*aux) f32
        gate = 0.5 * (jnp.tanh(0.5 * ij[:, :aux_dim]) + 1.0)   # sigmoid via EUP tanh
        val = jnp.tanh(ij[:, aux_dim:])
        gv = (gate * val).reshape(b_blk, V, aux_dim)
        h = jnp.tanh(gv.sum(axis=1))                    # (B_blk, aux) f32

        # MultiDenseLayer: Linear -> Dropout(0.0) -> Tanh chain.
        for w, b in mlp_w:
            h = jnp.tanh(jnp.dot(h.astype(jnp.bfloat16), w[...],
                                 preferred_element_type=jnp.float32) + b[...])

        o_ref[0] = h.astype(o_ref.dtype)                # single f32 store
    return kernel


# --------------------------------------------------------------------------- #
# Wrapper: one pallas_call for the whole forward.
# --------------------------------------------------------------------------- #
def graph_encoder_forward(packed, adj, node):
    B, V, m_dim = node.shape
    E = adj.shape[1] - 1                       # GCN uses all but the last edge channel
    n_gcn = len(packed["gcn"])
    n_mlp = len(packed["mlp"])
    gcn_units = packed["gcn_units"]
    aux_dim = packed["aux_dim"]
    out_dim = packed["mlp"][-1][0].shape[1]

    # >= 2 grid steps so both v7x TensorCores get work; each step handles B_blk graphs.
    n_blocks = 2 if B >= 2 else 1
    b_blk = -(-B // n_blocks)
    b_pad = n_blocks * b_blk
    if b_pad != B:
        node = jnp.pad(node, ((0, b_pad - B), (0, 0), (0, 0)))
        adj = jnp.pad(adj, ((0, b_pad - B), (0, 0), (0, 0), (0, 0)))

    adj_bf = adj.astype(jnp.bfloat16)          # exact for 0/1 adjacency; halves DMA bytes

    operands = [node, adj_bf]
    in_specs = [
        pl.BlockSpec((b_blk, V, m_dim), lambda b: (b, 0, 0)),
        # Block E over the (E+1)-channel adjacency: drops the last channel for free.
        pl.BlockSpec((b_blk, E, V, V), lambda b: (b, 0, 0, 0)),
    ]
    for l, layer in enumerate(packed["gcn"]):
        for arr in layer:
            operands.append(arr)
            in_specs.append(pl.BlockSpec(arr.shape, lambda b: (0, 0)))  # resident weights
    for arr in packed["agg"]:
        operands.append(arr)
        in_specs.append(pl.BlockSpec(arr.shape, lambda b: (0, 0)))
    for w, bias in packed["mlp"]:
        operands += [w, bias]
        in_specs += [pl.BlockSpec(w.shape, lambda b: (0, 0)),
                     pl.BlockSpec(bias.shape, lambda b: (0, 0))]

    out = pl.pallas_call(
        _make_fused_kernel(n_gcn, n_mlp, E, V, b_blk, m_dim, gcn_units, aux_dim),
        out_shape=jax.ShapeDtypeStruct((n_blocks, b_blk, out_dim), jnp.float32),
        grid=(n_blocks,),
        in_specs=in_specs,
        out_specs=pl.BlockSpec((1, b_blk, out_dim), lambda b: (b, 0, 0)),
        compiler_params=pltpu.CompilerParams(dimension_semantics=("parallel",)),
    )(*operands)
    return out.reshape(b_pad, out_dim)[:B]


# --------------------------------------------------------------------------- #
# Parameters (nn.Linear-style init, weights stored pre-transposed as (in, out)).
# --------------------------------------------------------------------------- #
def init_params(key, m_dim, edge_type_num, graph_conv_dim, aux_dim, linear_dim):
    n_linears = (edge_type_num + 1) * len(graph_conv_dim) + 2 + len(linear_dim)
    it = iter(jax.random.split(key, n_linears))

    def linear(fan_in, fan_out):
        kw, kb = jax.random.split(next(it))
        bound = 1.0 / (fan_in ** 0.5)
        w = jax.random.uniform(kw, (fan_in, fan_out), jnp.float32, -bound, bound)
        b = jax.random.uniform(kb, (fan_out,), jnp.float32, -bound, bound)
        return w, b

    gcn = []
    din = m_dim
    for u in graph_conv_dim:
        per_edge = [linear(din, u) for _ in range(edge_type_num)]
        w_adj = jnp.stack([w for w, _ in per_edge])              # (E, din, u)
        b_adj = jnp.stack([b[None, :] for _, b in per_edge])     # (E, 1, u)
        w_lin, b_lin = linear(din, u)
        gcn.append(dict(w_adj=w_adj, b_adj=b_adj, w_lin=w_lin, b_lin=b_lin[None, :]))
        din = m_dim + u                                          # next ann = cat(node, h)

    d_agg = m_dim + graph_conv_dim[-1]                           # ann = cat(node, h_gcn)
    wi, bi = linear(d_agg, aux_dim)
    wj, bj = linear(d_agg, aux_dim)
    agg = dict(wi=wi, bi=bi[None, :], wj=wj, bj=bj[None, :])

    mlp, k = [], aux_dim
    for n in linear_dim:
        w, b = linear(k, n)
        mlp.append((w, b[None, :]))
        k = n
    return dict(gcn=gcn, agg=agg, mlp=mlp)


def pack_params(params, m_dim, edge_type_num):
    """One-time packing: fuse per-edge + skip weights along N, split node/h rows,
    fuse i/j aggregation weights along N, pre-cast all matmul weights to bf16."""
    E = edge_type_num
    gcn_packed = []
    for l, layer in enumerate(params["gcn"]):
        w_all = jnp.concatenate([layer["w_adj"][e] for e in range(E)]
                                + [layer["w_lin"]], axis=1)       # (din, (E+1)*U)
        b_all = jnp.concatenate([layer["b_adj"][e] for e in range(E)]
                                + [layer["b_lin"]], axis=1)       # (1, (E+1)*U)
        if l == 0:
            gcn_packed.append((w_all.astype(jnp.bfloat16), b_all))
        else:   # ann = cat(node, h): rows [0:m_dim] -> node, rows [m_dim:] -> h
            gcn_packed.append((w_all[:m_dim].astype(jnp.bfloat16),
                               w_all[m_dim:].astype(jnp.bfloat16), b_all))
    agg = params["agg"]
    w_ij = jnp.concatenate([agg["wi"], agg["wj"]], axis=1)        # (m+U_last, 2*aux)
    b_ij = jnp.concatenate([agg["bi"], agg["bj"]], axis=1)        # (1, 2*aux)
    agg_packed = (w_ij[m_dim:].astype(jnp.bfloat16),              # h rows
                  w_ij[:m_dim].astype(jnp.bfloat16),              # node rows
                  b_ij)
    mlp_packed = [(w.astype(jnp.bfloat16), b) for w, b in params["mlp"]]
    return dict(gcn=gcn_packed, agg=agg_packed, mlp=mlp_packed,
                gcn_units=[layer["w_lin"].shape[1] for layer in params["gcn"]],
                aux_dim=agg["wi"].shape[1])


# --------------------------------------------------------------------------- #
# Reference (plain jnp) mirroring the PyTorch math and the kernel's bf16-operand /
# f32-accumulate MXU policy.
# --------------------------------------------------------------------------- #
def _mm(a, w):
    return jnp.dot(a.astype(jnp.bfloat16), w.astype(jnp.bfloat16),
                   preferred_element_type=jnp.float32)


def reference_forward(params, adj, node):
    adj = adj[:, :-1, :, :].astype(jnp.bfloat16)
    E = adj.shape[1]
    h = None
    for layer in params["gcn"]:
        ann = node if h is None else jnp.concatenate([node, h], axis=-1)
        stacked = jnp.stack([_mm(ann, layer["w_adj"][e]) + layer["b_adj"][e]
                             for e in range(E)], axis=1)          # (B, E, V, U)
        conv = jnp.einsum("bevw,bewu->bvu", adj, stacked.astype(jnp.bfloat16),
                          preferred_element_type=jnp.float32)
        lin2 = _mm(ann, layer["w_lin"]) + layer["b_lin"]
        h = jnp.tanh(conv + lin2)
    # agg_layer(output, node): n_tensor=output, out_tensor=node -> cat((node, h))
    ann = jnp.concatenate([node, h], axis=-1)
    gate = jax.nn.sigmoid(_mm(ann, params["agg"]["wi"]) + params["agg"]["bi"])
    val = jnp.tanh(_mm(ann, params["agg"]["wj"]) + params["agg"]["bj"])
    out = jnp.tanh(jnp.sum(gate * val, axis=1))
    for w, b in params["mlp"]:
        out = jnp.tanh(_mm(out, w) + b)
    return out


if __name__ == "__main__":
    B, V = 4, 8                   # batch, vertexes
    m_dim = 8                     # node feature dim
    b_dim = 3                     # GCN edge types; input adj carries b_dim + 1 channels
    graph_conv_dim = [128, 128]   # lane-dense hidden widths
    aux_dim = 128
    linear_dim = [128, 128]

    key = jax.random.PRNGKey(0)
    k_adj, k_node, k_par = jax.random.split(key, 3)
    adj = (jax.random.uniform(k_adj, (B, b_dim + 1, V, V)) < 0.3).astype(jnp.float32)
    node = jax.random.normal(k_node, (B, V, m_dim), jnp.float32)
    params = init_params(k_par, m_dim, b_dim, graph_conv_dim, aux_dim, linear_dim)
    packed = pack_params(params, m_dim, b_dim)

    out = jax.block_until_ready(graph_encoder_forward(packed, adj, node))
    ref = reference_forward(params, adj, node)

    assert out.shape == (B, linear_dim[-1])
    err = float(jnp.max(jnp.abs(out - ref)))
    assert err < 2e-2, f"max abs error {err} vs reference"
    print("KERNEL_OK")
</pallas_src>

<mosaic_0001>
module attributes {stable_mosaic.version = 11 : i64} {
  func.func @kernel(%arg0: i32, %arg1: memref<2x8x8xf32, #tpu.memory_space<vmem>>, %arg2: memref<2x3x8x8xbf16, #tpu.memory_space<vmem>>, %arg3: memref<8x512xbf16, #tpu.memory_space<vmem>>, %arg4: memref<1x512xf32, #tpu.memory_space<vmem>>, %arg5: memref<8x512xbf16, #tpu.memory_space<vmem>>, %arg6: memref<128x512xbf16, #tpu.memory_space<vmem>>, %arg7: memref<1x512xf32, #tpu.memory_space<vmem>>, %arg8: memref<128x256xbf16, #tpu.memory_space<vmem>>, %arg9: memref<8x256xbf16, #tpu.memory_space<vmem>>, %arg10: memref<1x256xf32, #tpu.memory_space<vmem>>, %arg11: memref<128x128xbf16, #tpu.memory_space<vmem>>, %arg12: memref<1x128xf32, #tpu.memory_space<vmem>>, %arg13: memref<128x128xbf16, #tpu.memory_space<vmem>>, %arg14: memref<1x128xf32, #tpu.memory_space<vmem>>, %arg15: memref<1x2x128xf32, #tpu.memory_space<vmem>>) attributes {dimension_semantics = [#tpu.dimension_semantics<parallel>], iteration_bounds = array<i64: 2>, scalar_prefetch = 0 : i64, scratch_operands = 0 : i64, tpu.core_type = #tpu.core_type<tc>, window_params = [{transform_indices = @transform_0, window_bounds = array<i64: 2, 8, 8>}, {transform_indices = @transform_1, window_bounds = array<i64: 2, 3, 8, 8>}, {pipeline_mode = #tpu.pipeline_mode<synchronous>, transform_indices = @transform_2, window_bounds = array<i64: 8, 512>}, {pipeline_mode = #tpu.pipeline_mode<synchronous>, transform_indices = @transform_3, window_bounds = array<i64: 1, 512>}, {pipeline_mode = #tpu.pipeline_mode<synchronous>, transform_indices = @transform_4, window_bounds = array<i64: 8, 512>}, {pipeline_mode = #tpu.pipeline_mode<synchronous>, transform_indices = @transform_5, window_bounds = array<i64: 128, 512>}, {pipeline_mode = #tpu.pipeline_mode<synchronous>, transform_indices = @transform_6, window_bounds = array<i64: 1, 512>}, {pipeline_mode = #tpu.pipeline_mode<synchronous>, transform_indices = @transform_7, window_bounds = array<i64: 128, 256>}, {pipeline_mode = #tpu.pipeline_mode<synchronous>, transform_indices = @transform_8, window_bounds = array<i64: 8, 256>}, {pipeline_mode = #tpu.pipeline_mode<synchronous>, transform_indices = @transform_9, window_bounds = array<i64: 1, 256>}, {pipeline_mode = #tpu.pipeline_mode<synchronous>, transform_indices = @transform_10, window_bounds = array<i64: 128, 128>}, {pipeline_mode = #tpu.pipeline_mode<synchronous>, transform_indices = @transform_11, window_bounds = array<i64: 1, 128>}, {pipeline_mode = #tpu.pipeline_mode<synchronous>, transform_indices = @transform_12, window_bounds = array<i64: 128, 128>}, {pipeline_mode = #tpu.pipeline_mode<synchronous>, transform_indices = @transform_13, window_bounds = array<i64: 1, 128>}, {transform_indices = @transform_14, window_bounds = array<i64: 1, 2, 128>}]} {
    %c0 = arith.constant 0 : index
    %c0_0 = arith.constant 0 : index
    %c0_1 = arith.constant 0 : index
    %0 = vector.load %arg1[%c0, %c0_0, %c0_1] : memref<2x8x8xf32, #tpu.memory_space<vmem>>, vector<2x8x8xf32>
    %1 = vector.shape_cast %0 : vector<2x8x8xf32> to vector<16x8xf32>
    %2 = arith.truncf %1 : vector<16x8xf32> to vector<16x8xbf16>
    %c0_2 = arith.constant 0 : index
    %c0_3 = arith.constant 0 : index
    %3 = vector.load %arg3[%c0_2, %c0_3] : memref<8x512xbf16, #tpu.memory_space<vmem>>, vector<8x512xbf16>
    %cst = arith.constant dense<0.000000e+00> : vector<16x512xf32>
    %4 = tpu.matmul %2, %3, %cst {dimension_numbers = #tpu.dot_dimension_numbers<[1], [0], [0], [1], [0, 0, 1, 1], [], []>} : vector<16x8xbf16>, vector<8x512xbf16>, vector<16x512xf32> -> vector<16x512xf32>
    %c0_4 = arith.constant 0 : index
    %c0_5 = arith.constant 0 : index
    %5 = vector.load %arg4[%c0_4, %c0_5] : memref<1x512xf32, #tpu.memory_space<vmem>>, vector<1x512xf32>
    %6 = vector.broadcast %5 : vector<1x512xf32> to vector<16x512xf32>
    %7 = arith.addf %4, %6 : vector<16x512xf32>
    %8 = vector.extract_strided_slice %7 {offsets = [0, 384], sizes = [16, 128], strides = [1, 1]} : vector<16x512xf32> to vector<16x128xf32>
    %9 = vector.extract_strided_slice %7 {offsets = [0, 0], sizes = [16, 384], strides = [1, 1]} : vector<16x512xf32> to vector<16x384xf32>
    %10 = arith.truncf %9 : vector<16x384xf32> to vector<16x384xbf16>
    %11 = vector.extract_strided_slice %8 {offsets = [0, 0], sizes = [8, 128], strides = [1, 1]} : vector<16x128xf32> to vector<8x128xf32>
    %c0_6 = arith.constant 0 : index
    %c0_7 = arith.constant 0 : index
    %c0_8 = arith.constant 0 : index
    %c0_9 = arith.constant 0 : index
    %12 = vector.load %arg2[%c0_6, %c0_7, %c0_8, %c0_9] : memref<2x3x8x8xbf16, #tpu.memory_space<vmem>>, vector<1x1x8x8xbf16>
    %13 = vector.shape_cast %12 : vector<1x1x8x8xbf16> to vector<8x8xbf16>
    %14 = vector.extract_strided_slice %10 {offsets = [0, 0], sizes = [8, 128], strides = [1, 1]} : vector<16x384xbf16> to vector<8x128xbf16>
    %cst_10 = arith.constant dense<0.000000e+00> : vector<8x128xf32>
    %15 = tpu.matmul %13, %14, %cst_10 {dimension_numbers = #tpu.dot_dimension_numbers<[1], [0], [0], [1], [0, 0, 1, 1], [], []>} : vector<8x8xbf16>, vector<8x128xbf16>, vector<8x128xf32> -> vector<8x128xf32>
    %16 = arith.addf %11, %15 : vector<8x128xf32>
    %c0_11 = arith.constant 0 : index
    %c1 = arith.constant 1 : index
    %c0_12 = arith.constant 0 : index
    %c0_13 = arith.constant 0 : index
    %17 = vector.load %arg2[%c0_11, %c1, %c0_12, %c0_13] : memref<2x3x8x8xbf16, #tpu.memory_space<vmem>>, vector<1x1x8x8xbf16>
    %18 = vector.shape_cast %17 : vector<1x1x8x8xbf16> to vector<8x8xbf16>
    %19 = vector.extract_strided_slice %10 {offsets = [0, 128], sizes = [8, 128], strides = [1, 1]} : vector<16x384xbf16> to vector<8x128xbf16>
    %cst_14 = arith.constant dense<0.000000e+00> : vector<8x128xf32>
    %20 = tpu.matmul %18, %19, %cst_14 {dimension_numbers = #tpu.dot_dimension_numbers<[1], [0], [0], [1], [0, 0, 1, 1], [], []>} : vector<8x8xbf16>, vector<8x128xbf16>, vector<8x128xf32> -> vector<8x128xf32>
    %21 = arith.addf %16, %20 : vector<8x128xf32>
    %c0_15 = arith.constant 0 : index
    %c2 = arith.constant 2 : index
    %c0_16 = arith.constant 0 : index
    %c0_17 = arith.constant 0 : index
    %22 = vector.load %arg2[%c0_15, %c2, %c0_16, %c0_17] : memref<2x3x8x8xbf16, #tpu.memory_space<vmem>>, vector<1x1x8x8xbf16>
    %23 = vector.shape_cast %22 : vector<1x1x8x8xbf16> to vector<8x8xbf16>
    %24 = vector.extract_strided_slice %10 {offsets = [0, 256], sizes = [8, 128], strides = [1, 1]} : vector<16x384xbf16> to vector<8x128xbf16>
    %cst_18 = arith.constant dense<0.000000e+00> : vector<8x128xf32>
    %25 = tpu.matmul %23, %24, %cst_18 {dimension_numbers = #tpu.dot_dimension_numbers<[1], [0], [0], [1], [0, 0, 1, 1], [], []>} : vector<8x8xbf16>, vector<8x128xbf16>, vector<8x128xf32> -> vector<8x128xf32>
    %26 = arith.addf %21, %25 : vector<8x128xf32>
    %27 = math.tanh %26 : vector<8x128xf32>
    %28 = vector.extract_strided_slice %8 {offsets = [8, 0], sizes = [8, 128], strides = [1, 1]} : vector<16x128xf32> to vector<8x128xf32>
    %c1_19 = arith.constant 1 : index
    %c0_20 = arith.constant 0 : index
    %c0_21 = arith.constant 0 : index
    %c0_22 = arith.constant 0 : index
    %29 = vector.load %arg2[%c1_19, %c0_20, %c0_21, %c0_22] : memref<2x3x8x8xbf16, #tpu.memory_space<vmem>>, vector<1x1x8x8xbf16>
    %30 = vector.shape_cast %29 : vector<1x1x8x8xbf16> to vector<8x8xbf16>
    %31 = vector.extract_strided_slice %10 {offsets = [8, 0], sizes = [8, 128], strides = [1, 1]} : vector<16x384xbf16> to vector<8x128xbf16>
    %cst_23 = arith.constant dense<0.000000e+00> : vector<8x128xf32>
    %32 = tpu.matmul %30, %31, %cst_23 {dimension_numbers = #tpu.dot_dimension_numbers<[1], [0], [0], [1], [0, 0, 1, 1], [], []>} : vector<8x8xbf16>, vector<8x128xbf16>, vector<8x128xf32> -> vector<8x128xf32>
    %33 = arith.addf %28, %32 : vector<8x128xf32>
    %c1_24 = arith.constant 1 : index
    %c1_25 = arith.constant 1 : index
    %c0_26 = arith.constant 0 : index
    %c0_27 = arith.constant 0 : index
    %34 = vector.load %arg2[%c1_24, %c1_25, %c0_26, %c0_27] : memref<2x3x8x8xbf16, #tpu.memory_space<vmem>>, vector<1x1x8x8xbf16>
    %35 = vector.shape_cast %34 : vector<1x1x8x8xbf16> to vector<8x8xbf16>
    %36 = vector.extract_strided_slice %10 {offsets = [8, 128], sizes = [8, 128], strides = [1, 1]} : vector<16x384xbf16> to vector<8x128xbf16>
    %cst_28 = arith.constant dense<0.000000e+00> : vector<8x128xf32>
    %37 = tpu.matmul %35, %36, %cst_28 {dimension_numbers = #tpu.dot_dimension_numbers<[1], [0], [0], [1], [0, 0, 1, 1], [], []>} : vector<8x8xbf16>, vector<8x128xbf16>, vector<8x128xf32> -> vector<8x128xf32>
    %38 = arith.addf %33, %37 : vector<8x128xf32>
    %c1_29 = arith.constant 1 : index
    %c2_30 = arith.constant 2 : index
    %c0_31 = arith.constant 0 : index
    %c0_32 = arith.constant 0 : index
    %39 = vector.load %arg2[%c1_29, %c2_30, %c0_31, %c0_32] : memref<2x3x8x8xbf16, #tpu.memory_space<vmem>>, vector<1x1x8x8xbf16>
    %40 = vector.shape_cast %39 : vector<1x1x8x8xbf16> to vector<8x8xbf16>
    %41 = vector.extract_strided_slice %10 {offsets = [8, 256], sizes = [8, 128], strides = [1, 1]} : vector<16x384xbf16> to vector<8x128xbf16>
    %cst_33 = arith.constant dense<0.000000e+00> : vector<8x128xf32>
    %42 = tpu.matmul %40, %41, %cst_33 {dimension_numbers = #tpu.dot_dimension_numbers<[1], [0], [0], [1], [0, 0, 1, 1], [], []>} : vector<8x8xbf16>, vector<8x128xbf16>, vector<8x128xf32> -> vector<8x128xf32>
    %43 = arith.addf %38, %42 : vector<8x128xf32>
    %44 = math.tanh %43 : vector<8x128xf32>
    %45 = tpu.concatenate %27, %44 in 0 : vector<8x128xf32>, vector<8x128xf32> -> vector<16x128xf32>
    %46 = arith.truncf %45 : vector<16x128xf32> to vector<16x128xbf16>
    %c0_34 = arith.constant 0 : index
    %c0_35 = arith.constant 0 : index
    %47 = vector.load %arg5[%c0_34, %c0_35] : memref<8x512xbf16, #tpu.memory_space<vmem>>, vector<8x512xbf16>
    %cst_36 = arith.constant dense<0.000000e+00> : vector<16x512xf32>
    %48 = tpu.matmul %2, %47, %cst_36 {dimension_numbers = #tpu.dot_dimension_numbers<[1], [0], [0], [1], [0, 0, 1, 1], [], []>} : vector<16x8xbf16>, vector<8x512xbf16>, vector<16x512xf32> -> vector<16x512xf32>
    %c0_37 = arith.constant 0 : index
    %c0_38 = arith.constant 0 : index
    %49 = vector.load %arg6[%c0_37, %c0_38] : memref<128x512xbf16, #tpu.memory_space<vmem>>, vector<128x512xbf16>
    %cst_39 = arith.constant dense<0.000000e+00> : vector<16x512xf32>
    %50 = tpu.matmul %46, %49, %cst_39 {dimension_numbers = #tpu.dot_dimension_numbers<[1], [0], [0], [1], [0, 0, 1, 1], [], []>} : vector<16x128xbf16>, vector<128x512xbf16>, vector<16x512xf32> -> vector<16x512xf32>
    %51 = arith.addf %48, %50 : vector<16x512xf32>
    %c0_40 = arith.constant 0 : index
    %c0_41 = arith.constant 0 : index
    %52 = vector.load %arg7[%c0_40, %c0_41] : memref<1x512xf32, #tpu.memory_space<vmem>>, vector<1x512xf32>
    %53 = vector.broadcast %52 : vector<1x512xf32> to vector<16x512xf32>
    %54 = arith.addf %51, %53 : vector<16x512xf32>
    %55 = vector.extract_strided_slice %54 {offsets = [0, 384], sizes = [16, 128], strides = [1, 1]} : vector<16x512xf32> to vector<16x128xf32>
    %56 = vector.extract_strided_slice %54 {offsets = [0, 0], sizes = [16, 384], strides = [1, 1]} : vector<16x512xf32> to vector<16x384xf32>
    %57 = arith.truncf %56 : vector<16x384xf32> to vector<16x384xbf16>
    %58 = vector.extract_strided_slice %55 {offsets = [0, 0], sizes = [8, 128], strides = [1, 1]} : vector<16x128xf32> to vector<8x128xf32>
    %c0_42 = arith.constant 0 : index
    %c0_43 = arith.constant 0 : index
    %c0_44 = arith.constant 0 : index
    %c0_45 = arith.constant 0 : index
    %59 = vector.load %arg2[%c0_42, %c0_43, %c0_44, %c0_45] : memref<2x3x8x8xbf16, #tpu.memory_space<vmem>>, vector<1x1x8x8xbf16>
    %60 = vector.shape_cast %59 : vector<1x1x8x8xbf16> to vector<8x8xbf16>
    %61 = vector.extract_strided_slice %57 {offsets = [0, 0], sizes = [8, 128], strides = [1, 1]} : vector<16x384xbf16> to vector<8x128xbf16>
    %cst_46 = arith.constant dense<0.000000e+00> : vector<8x128xf32>
    %62 = tpu.matmul %60, %61, %cst_46 {dimension_numbers = #tpu.dot_dimension_numbers<[1], [0], [0], [1], [0, 0, 1, 1], [], []>} : vector<8x8xbf16>, vector<8x128xbf16>, vector<8x128xf32> -> vector<8x128xf32>
    %63 = arith.addf %58, %62 : vector<8x128xf32>
    %c0_47 = arith.constant 0 : index
    %c1_48 = arith.constant 1 : index
    %c0_49 = arith.constant 0 : index
    %c0_50 = arith.constant 0 : index
    %64 = vector.load %arg2[%c0_47, %c1_48, %c0_49, %c0_50] : memref<2x3x8x8xbf16, #tpu.memory_space<vmem>>, vector<1x1x8x8xbf16>
    %65 = vector.shape_cast %64 : vector<1x1x8x8xbf16> to vector<8x8xbf16>
    %66 = vector.extract_strided_slice %57 {offsets = [0, 128], sizes = [8, 128], strides = [1, 1]} : vector<16x384xbf16> to vector<8x128xbf16>
    %cst_51 = arith.constant dense<0.000000e+00> : vector<8x128xf32>
    %67 = tpu.matmul %65, %66, %cst_51 {dimension_numbers = #tpu.dot_dimension_numbers<[1], [0], [0], [1], [0, 0, 1, 1], [], []>} : vector<8x8xbf16>, vector<8x128xbf16>, vector<8x128xf32> -> vector<8x128xf32>
    %68 = arith.addf %63, %67 : vector<8x128xf32>
    %c0_52 = arith.constant 0 : index
    %c2_53 = arith.constant 2 : index
    %c0_54 = arith.constant 0 : index
    %c0_55 = arith.constant 0 : index
    %69 = vector.load %arg2[%c0_52, %c2_53, %c0_54, %c0_55] : memref<2x3x8x8xbf16, #tpu.memory_space<vmem>>, vector<1x1x8x8xbf16>
    %70 = vector.shape_cast %69 : vector<1x1x8x8xbf16> to vector<8x8xbf16>
    %71 = vector.extract_strided_slice %57 {offsets = [0, 256], sizes = [8, 128], strides = [1, 1]} : vector<16x384xbf16> to vector<8x128xbf16>
    %cst_56 = arith.constant dense<0.000000e+00> : vector<8x128xf32>
    %72 = tpu.matmul %70, %71, %cst_56 {dimension_numbers = #tpu.dot_dimension_numbers<[1], [0], [0], [1], [0, 0, 1, 1], [], []>} : vector<8x8xbf16>, vector<8x128xbf16>, vector<8x128xf32> -> vector<8x128xf32>
    %73 = arith.addf %68, %72 : vector<8x128xf32>
    %74 = math.tanh %73 : vector<8x128xf32>
    %75 = vector.extract_strided_slice %55 {offsets = [8, 0], sizes = [8, 128], strides = [1, 1]} : vector<16x128xf32> to vector<8x128xf32>
    %c1_57 = arith.constant 1 : index
    %c0_58 = arith.constant 0 : index
    %c0_59 = arith.constant 0 : index
    %c0_60 = arith.constant 0 : index
    %76 = vector.load %arg2[%c1_57, %c0_58, %c0_59, %c0_60] : memref<2x3x8x8xbf16, #tpu.memory_space<vmem>>, vector<1x1x8x8xbf16>
    %77 = vector.shape_cast %76 : vector<1x1x8x8xbf16> to vector<8x8xbf16>
    %78 = vector.extract_strided_slice %57 {offsets = [8, 0], sizes = [8, 128], strides = [1, 1]} : vector<16x384xbf16> to vector<8x128xbf16>
    %cst_61 = arith.constant dense<0.000000e+00> : vector<8x128xf32>
    %79 = tpu.matmul %77, %78, %cst_61 {dimension_numbers = #tpu.dot_dimension_numbers<[1], [0], [0], [1], [0, 0, 1, 1], [], []>} : vector<8x8xbf16>, vector<8x128xbf16>, vector<8x128xf32> -> vector<8x128xf32>
    %80 = arith.addf %75, %79 : vector<8x128xf32>
    %c1_62 = arith.constant 1 : index
    %c1_63 = arith.constant 1 : index
    %c0_64 = arith.constant 0 : index
    %c0_65 = arith.constant 0 : index
    %81 = vector.load %arg2[%c1_62, %c1_63, %c0_64, %c0_65] : memref<2x3x8x8xbf16, #tpu.memory_space<vmem>>, vector<1x1x8x8xbf16>
    %82 = vector.shape_cast %81 : vector<1x1x8x8xbf16> to vector<8x8xbf16>
    %83 = vector.extract_strided_slice %57 {offsets = [8, 128], sizes = [8, 128], strides = [1, 1]} : vector<16x384xbf16> to vector<8x128xbf16>
    %cst_66 = arith.constant dense<0.000000e+00> : vector<8x128xf32>
    %84 = tpu.matmul %82, %83, %cst_66 {dimension_numbers = #tpu.dot_dimension_numbers<[1], [0], [0], [1], [0, 0, 1, 1], [], []>} : vector<8x8xbf16>, vector<8x128xbf16>, vector<8x128xf32> -> vector<8x128xf32>
    %85 = arith.addf %80, %84 : vector<8x128xf32>
    %c1_67 = arith.constant 1 : index
    %c2_68 = arith.constant 2 : index
    %c0_69 = arith.constant 0 : index
    %c0_70 = arith.constant 0 : index
    %86 = vector.load %arg2[%c1_67, %c2_68, %c0_69, %c0_70] : memref<2x3x8x8xbf16, #tpu.memory_space<vmem>>, vector<1x1x8x8xbf16>
    %87 = vector.shape_cast %86 : vector<1x1x8x8xbf16> to vector<8x8xbf16>
    %88 = vector.extract_strided_slice %57 {offsets = [8, 256], sizes = [8, 128], strides = [1, 1]} : vector<16x384xbf16> to vector<8x128xbf16>
    %cst_71 = arith.constant dense<0.000000e+00> : vector<8x128xf32>
    %89 = tpu.matmul %87, %88, %cst_71 {dimension_numbers = #tpu.dot_dimension_numbers<[1], [0], [0], [1], [0, 0, 1, 1], [], []>} : vector<8x8xbf16>, vector<8x128xbf16>, vector<8x128xf32> -> vector<8x128xf32>
    %90 = arith.addf %85, %89 : vector<8x128xf32>
    %91 = math.tanh %90 : vector<8x128xf32>
    %92 = tpu.concatenate %74, %91 in 0 : vector<8x128xf32>, vector<8x128xf32> -> vector<16x128xf32>
    %93 = arith.truncf %92 : vector<16x128xf32> to vector<16x128xbf16>
    %c0_72 = arith.constant 0 : index
    %c0_73 = arith.constant 0 : index
    %94 = vector.load %arg8[%c0_72, %c0_73] : memref<128x256xbf16, #tpu.memory_space<vmem>>, vector<128x256xbf16>
    %cst_74 = arith.constant dense<0.000000e+00> : vector<16x256xf32>
    %95 = tpu.matmul %93, %94, %cst_74 {dimension_numbers = #tpu.dot_dimension_numbers<[1], [0], [0], [1], [0, 0, 1, 1], [], []>} : vector<16x128xbf16>, vector<128x256xbf16>, vector<16x256xf32> -> vector<16x256xf32>
    %c0_75 = arith.constant 0 : index
    %c0_76 = arith.constant 0 : index
    %96 = vector.load %arg9[%c0_75, %c0_76] : memref<8x256xbf16, #tpu.memory_space<vmem>>, vector<8x256xbf16>
    %cst_77 = arith.constant dense<0.000000e+00> : vector<16x256xf32>
    %97 = tpu.matmul %2, %96, %cst_77 {dimension_numbers = #tpu.dot_dimension_numbers<[1], [0], [0], [1], [0, 0, 1, 1], [], []>} : vector<16x8xbf16>, vector<8x256xbf16>, vector<16x256xf32> -> vector<16x256xf32>
    %98 = arith.addf %95, %97 : vector<16x256xf32>
    %c0_78 = arith.constant 0 : index
    %c0_79 = arith.constant 0 : index
    %99 = vector.load %arg10[%c0_78, %c0_79] : memref<1x256xf32, #tpu.memory_space<vmem>>, vector<1x256xf32>
    %100 = vector.broadcast %99 : vector<1x256xf32> to vector<16x256xf32>
    %101 = arith.addf %98, %100 : vector<16x256xf32>
    %102 = vector.extract_strided_slice %101 {offsets = [0, 0], sizes = [16, 128], strides = [1, 1]} : vector<16x256xf32> to vector<16x128xf32>
    %cst_80 = arith.constant 5.000000e-01 : f32
    %103 = vector.broadcast %cst_80 : f32 to vector<16x128xf32>
    %104 = arith.mulf %103, %102 : vector<16x128xf32>
    %105 = math.tanh %104 : vector<16x128xf32>
    %cst_81 = arith.constant 1.000000e+00 : f32
    %106 = vector.broadcast %cst_81 : f32 to vector<16x128xf32>
    %107 = arith.addf %105, %106 : vector<16x128xf32>
    %cst_82 = arith.constant 5.000000e-01 : f32
    %108 = vector.broadcast %cst_82 : f32 to vector<16x128xf32>
    %109 = arith.mulf %108, %107 : vector<16x128xf32>
    %110 = vector.extract_strided_slice %101 {offsets = [0, 128], sizes = [16, 128], strides = [1, 1]} : vector<16x256xf32> to vector<16x128xf32>
    %111 = math.tanh %110 : vector<16x128xf32>
    %112 = arith.mulf %109, %111 : vector<16x128xf32>
    %113 = vector.shape_cast %112 : vector<16x128xf32> to vector<2x8x128xf32>
    %cst_83 = arith.constant dense<0.000000e+00> : vector<2x128xf32>
    %114 = vector.multi_reduction <add>, %113, %cst_83 [1] : vector<2x8x128xf32> to vector<2x128xf32>
    %115 = math.tanh %114 : vector<2x128xf32>
    %116 = arith.truncf %115 : vector<2x128xf32> to vector<2x128xbf16>
    %c0_84 = arith.constant 0 : index
    %c0_85 = arith.constant 0 : index
    %117 = vector.load %arg11[%c0_84, %c0_85] : memref<128x128xbf16, #tpu.memory_space<vmem>>, vector<128x128xbf16>
    %cst_86 = arith.constant dense<0.000000e+00> : vector<2x128xf32>
    %118 = tpu.matmul %116, %117, %cst_86 {dimension_numbers = #tpu.dot_dimension_numbers<[1], [0], [0], [1], [0, 0, 1, 1], [], []>} : vector<2x128xbf16>, vector<128x128xbf16>, vector<2x128xf32> -> vector<2x128xf32>
    %c0_87 = arith.constant 0 : index
    %c0_88 = arith.constant 0 : index
    %119 = vector.load %arg12[%c0_87, %c0_88] : memref<1x128xf32, #tpu.memory_space<vmem>>, vector<1x128xf32>
    %120 = vector.broadcast %119 : vector<1x128xf32> to vector<2x128xf32>
    %121 = arith.addf %118, %120 : vector<2x128xf32>
    %122 = math.tanh %121 : vector<2x128xf32>
    %123 = arith.truncf %122 : vector<2x128xf32> to vector<2x128xbf16>
    %c0_89 = arith.constant 0 : index
    %c0_90 = arith.constant 0 : index
    %124 = vector.load %arg13[%c0_89, %c0_90] : memref<128x128xbf16, #tpu.memory_space<vmem>>, vector<128x128xbf16>
    %cst_91 = arith.constant dense<0.000000e+00> : vector<2x128xf32>
    %125 = tpu.matmul %123, %124, %cst_91 {dimension_numbers = #tpu.dot_dimension_numbers<[1], [0], [0], [1], [0, 0, 1, 1], [], []>} : vector<2x128xbf16>, vector<128x128xbf16>, vector<2x128xf32> -> vector<2x128xf32>
    %c0_92 = arith.constant 0 : index
    %c0_93 = arith.constant 0 : index
    %126 = vector.load %arg14[%c0_92, %c0_93] : memref<1x128xf32, #tpu.memory_space<vmem>>, vector<1x128xf32>
    %127 = vector.broadcast %126 : vector<1x128xf32> to vector<2x128xf32>
    %128 = arith.addf %125, %127 : vector<2x128xf32>
    %129 = math.tanh %128 : vector<2x128xf32>
    %c0_94 = arith.constant 0 : index
    %c0_95 = arith.constant 0 : index
    %c0_96 = arith.constant 0 : index
    %130 = vector.load %arg15[%c0_94, %c0_95, %c0_96] : memref<1x2x128xf32, #tpu.memory_space<vmem>>, vector<1x2x128xf32>
    %131 = vector.shape_cast %130 : vector<1x2x128xf32> to vector<2x128xf32>
    %132 = vector.shape_cast %129 : vector<2x128xf32> to vector<1x2x128xf32>
    tpu.vector_store %arg15[%c0_94, %c0_95, %c0_96], %132 {strides = array<i32>} : memref<1x2x128xf32, #tpu.memory_space<vmem>>, vector<1x2x128xf32>,
    return
  }
  func.func @transform_0(%arg0: i32) -> (i32, i32, i32) {
    %c0_i32 = arith.constant 0 : i32
    %c0_i32_0 = arith.constant 0 : i32
    %c0_i32_1 = arith.constant 0 : i32
    return %arg0, %c0_i32, %c0_i32_0 : i32, i32, i32
  }
  func.func @transform_1(%arg0: i32) -> (i32, i32, i32, i32) {
    %c0_i32 = arith.constant 0 : i32
    %c0_i32_0 = arith.constant 0 : i32
    %c0_i32_1 = arith.constant 0 : i32
    %c0_i32_2 = arith.constant 0 : i32
    return %arg0, %c0_i32, %c0_i32_0, %c0_i32_1 : i32, i32, i32, i32
  }
  func.func @transform_2(%arg0: i32) -> (i32, i32) {
    %c0_i32 = arith.constant 0 : i32
    %c0_i32_0 = arith.constant 0 : i32
    %c0_i32_1 = arith.constant 0 : i32
    return %c0_i32, %c0_i32_0 : i32, i32
  }
  func.func @transform_3(%arg0: i32) -> (i32, i32) {
    %c0_i32 = arith.constant 0 : i32
    %c0_i32_0 = arith.constant 0 : i32
    %c0_i32_1 = arith.constant 0 : i32
    return %c0_i32, %c0_i32_0 : i32, i32
  }
  func.func @transform_4(%arg0: i32) -> (i32, i32) {
    %c0_i32 = arith.constant 0 : i32
    %c0_i32_0 = arith.constant 0 : i32
    %c0_i32_1 = arith.constant 0 : i32
    return %c0_i32, %c0_i32_0 : i32, i32
  }
  func.func @transform_5(%arg0: i32) -> (i32, i32) {
    %c0_i32 = arith.constant 0 : i32
    %c0_i32_0 = arith.constant 0 : i32
    %c0_i32_1 = arith.constant 0 : i32
    return %c0_i32, %c0_i32_0 : i32, i32
  }
  func.func @transform_6(%arg0: i32) -> (i32, i32) {
    %c0_i32 = arith.constant 0 : i32
    %c0_i32_0 = arith.constant 0 : i32
    %c0_i32_1 = arith.constant 0 : i32
    return %c0_i32, %c0_i32_0 : i32, i32
  }
  func.func @transform_7(%arg0: i32) -> (i32, i32) {
    %c0_i32 = arith.constant 0 : i32
    %c0_i32_0 = arith.constant 0 : i32
    %c0_i32_1 = arith.constant 0 : i32
    return %c0_i32, %c0_i32_0 : i32, i32
  }
  func.func @transform_8(%arg0: i32) -> (i32, i32) {
    %c0_i32 = arith.constant 0 : i32
    %c0_i32_0 = arith.constant 0 : i32
    %c0_i32_1 = arith.constant 0 : i32
    return %c0_i32, %c0_i32_0 : i32, i32
  }
  func.func @transform_9(%arg0: i32) -> (i32, i32) {
    %c0_i32 = arith.constant 0 : i32
    %c0_i32_0 = arith.constant 0 : i32
    %c0_i32_1 = arith.constant 0 : i32
    return %c0_i32, %c0_i32_0 : i32, i32
  }
  func.func @transform_10(%arg0: i32) -> (i32, i32) {
    %c0_i32 = arith.constant 0 : i32
    %c0_i32_0 = arith.constant 0 : i32
    %c0_i32_1 = arith.constant 0 : i32
    return %c0_i32, %c0_i32_0 : i32, i32
  }
  func.func @transform_11(%arg0: i32) -> (i32, i32) {
    %c0_i32 = arith.constant 0 : i32
    %c0_i32_0 = arith.constant 0 : i32
    %c0_i32_1 = arith.constant 0 : i32
    return %c0_i32, %c0_i32_0 : i32, i32
  }
  func.func @transform_12(%arg0: i32) -> (i32, i32) {
    %c0_i32 = arith.constant 0 : i32
    %c0_i32_0 = arith.constant 0 : i32
    %c0_i32_1 = arith.constant 0 : i32
    return %c0_i32, %c0_i32_0 : i32, i32
  }
  func.func @transform_13(%arg0: i32) -> (i32, i32) {
    %c0_i32 = arith.constant 0 : i32
    %c0_i32_0 = arith.constant 0 : i32
    %c0_i32_1 = arith.constant 0 : i32
    return %c0_i32, %c0_i32_0 : i32, i32
  }
  func.func @transform_14(%arg0: i32) -> (i32, i32, i32) {
    %c0_i32 = arith.constant 0 : i32
    %c0_i32_0 = arith.constant 0 : i32
    %c0_i32_1 = arith.constant 0 : i32
    return %arg0, %c0_i32, %c0_i32_0 : i32, i32, i32
  }
}

</mosaic_0001>

<bundles_post_ra>
// kernel: tpu_custom_call.1
= control target key start
LH: loop header
LB: loop body
LE: loop exit
PB: predicated region body
PF: predicated region fallthrough
CT: control target
= control target key end

     0   :  { %s3306_s0 = inlined_call_operand.hbm [shape: f32[4,8,8], index: 0, kind: input, shape index: {}]   ;;  %s3307_s1 = inlined_call_operand.hbm [shape: bf16[4,4,8,8], index: 1, kind: input, shape index: {}]   ;;  %s3308_s2 = inlined_call_operand.hbm [shape: bf16[8,512], index: 2, kind: input, shape index: {}]   ;;  %s3309_s3 = inlined_call_operand.hbm [shape: f32[1,512], index: 3, kind: input, shape index: {}]   ;;  %s3310_s4 = inlined_call_operand.hbm [shape: bf16[8,512], index: 4, kind: input, shape index: {}]   ;;  %s3311_s5 = inlined_call_operand.hbm [shape: bf16[128,512], index: 5, kind: input, shape index: {}]   ;;  %s3312_s6 = inlined_call_operand.vmem [shape: f32[1,512], index: 6, kind: input, shape index: {}]   ;;  %s3313_s7 = inlined_call_operand.hbm [shape: bf16[128,256], index: 7, kind: input, shape index: {}]   ;;  %s3314_s8 = inlined_call_operand.hbm [shape: bf16[8,256], index: 8, kind: input, shape index: {}]   ;;  %s3315_s9 = inlined_call_operand.vmem [shape: f32[1,256], index: 9, kind: input, shape index: {}]   ;;  %s3316_s10 = inlined_call_operand.hbm [shape: bf16[128,128], index: 10, kind: input, shape index: {}]   ;;  %s3317_s11 = inlined_call_operand.vmem [shape: f32[1,128], index: 11, kind: input, shape index: {}]   ;;  %s3318_s12 = inlined_call_operand.hbm [shape: bf16[128,128], index: 12, kind: input, shape index: {}]   ;;  %s3319_s13 = inlined_call_operand.vmem [shape: f32[1,128], index: 13, kind: input, shape index: {}]   ;;  %s3320_s14 = inlined_call_operand.hbm [shape: f32[2,2,128], index: 14, kind: output, shape index: {}]  }
   0x1   :  { %3328 = sst [smem:[#allocation36_spill]] %s3309_s3 }
   0x2   :  { %3329 = sst [smem:[#allocation37_spill]] %s3311_s5 }
   0x3   :  { %3330 = sst [smem:[#allocation38_spill]] %s3314_s8 }
   0x4   :  { %3331 = sst [smem:[#allocation39_spill]] %s3315_s9 }
   0x5   :  { %3332 = sst [smem:[#allocation40_spill]] %s3317_s11 }
   0x6   :  { %3333 = sst [smem:[#allocation41_spill]] %s3319_s13 }
   0x7   :  { %3334 = sst [smem:[#allocation42_spill]] %s3320_s14 }
   0x8   :  { %19 = vsyncpa [#allocation3], 0 }
   0x9   :  { %21 = vsyncpa [#allocation3 + $0x1], 0 }
   0xa   :  { %22 = vsyncpa [#allocation6], 0 }
   0xb   :  { %24 = vsyncpa [#allocation6 + $0x1], 0 }
   0xc   :  { %25 = vsyncpa [#allocation9], 0 }
   0xd   :  { %26 = vsyncpa [#allocation12], 0 }
   0xe   :  { %27 = vsyncpa [#allocation15], 0 }
   0xf   :  { %28 = vsyncpa [#allocation18], 0 }
  0x10   :  { %29 = vsyncpa [#allocation4], 0 }
  0x11   :  { %31 = vsyncpa [#allocation4 + $0x1], 0  ;;  %s2961_s29 = smov 0   ;;  %s2963_s30 = smov 0  }
  0x12   :  { %s2965_s15 = smov 0   ;;  %s2967_s16 = smov 0  }
  0x13 LB: > { %3335 = sst [smem:[#allocation31_spill]] %s2850_s29  ;;  %s2982_s17 = sadd.s32 4294967295, %s2862_s16   ;;  %s2862_s16 = sphi %s2967_s16, %s3356_s16   ;;  %s2858_s15 = sphi %s2965_s15, %s3360_s15   ;;  %s2854_s30 = sphi %s2963_s30, %s3359_s30   ;;  %s2850_s29 = sphi %s2961_s29, %s3358_s29  }
  0x14   : > { %s1947_s18 = sadd.s32 4294967294, %s2862_s16   ;;  %s2986_s19 = sadd.s32 1, %s2862_s16  }
  0x15   : > { %3336 = sst [smem:[#allocation32_spill]] %s2986_s19  ;;  %s44_s20 = sadd.s32 1, %s2858_s15 }
  0x16   : > { %s41_s21 = ssub.s32 %s2862_s16, %s2986_s19  ;;  %p51_p0 = scmp.ne.s32.totalorder %s2858_s15, %s2854_s30 }
  0x17   : > { %p42_p1 = scmp.eq.s32.totalorder %s41_s21, 0  ;;  %p52_p2 = scmp.eq.s32.totalorder %s2862_s16, 0 }
  0x18   : > { %p57_p3 = scmp.ne.s32.totalorder %s2854_s30, %s2850_s29  ;;  %p58_p4 = scmp.eq.s32.totalorder %s2982_s17, 0 }
  0x19   : > { %s2998_s22 = scalar_select %p42_p1, %s2858_s15, %s44_s20  }
  0x1a   : > { %p3000_p5 = por %p52_p2, %p51_p0  ;;  %p3006_p6 = por %p58_p4, %p57_p3 }
  0x1b   : > { %3337 = sst [smem:[#allocation33_spill]] %s2998_s22  ;;  %p359_p7 = scmp.eq.s32.totalorder %s2982_s17, 1 }
  0x1c   : > { %p365_p8 = scmp.eq.s32.totalorder %s1947_s18, 1  ;;  %p1948_p9 = scmp.ge.s32.totalorder %s2862_s16, 1 }
  0x1d   : > { %p372_p10 = scmp.lt.s32.totalorder %s2862_s16, 3  ;;  %p3013_p11 = por %p359_p7, %p51_p0 }
  0x1e   : > { %p3017_p12 = por %p365_p8, %p57_p3  ;;  %s3345_s3 = sld [smem:[#allocation36_spill]] }
  0x1f   : > { %s3340_s25 = scalar_select %p3013_p11, 1, 0 }
  0x20   : > { %s3342_s26 = scalar_select %p3017_p12, 1, 0 }
  0x21   : > { %3341 = sst [smem:[#allocation34_spill]] %s3340_s25  ;;  %p3021_p13 = pnand %p1948_p9, %p372_p10 }
  0x22   : > { %3343 = sst [smem:[#allocation35_spill]] %s3342_s26  ;;  %s2864_s18 = smov [#allocation8]  }
  0x23   : > { %p2378_p1 = pneg %p3021_p13  ;;  %s398_s22 = sshll.u32 %s2864_s18, 4  ;;  %s399_s22 = int_to_ptr.vmem [resolvable:$true] %s398_s22 }
  0x24   : > { %s396_s21 = sshll.u32 %s3345_s3, 4  ;;  %s3346_s5 = sld [smem:[#allocation37_spill]]  ;;  %s397_s21 = int_to_ptr.hbm [resolvable:$true] %s396_s21 }
  0x25   : > { %p3035_p0 = pnand %p2378_p1, %p58_p4  ;;  %s2865_s28 = smov [#allocation11]  }
  0x26   : > { %s421_s20 = sshll.u32 %s2865_s28, 4  ;;  %s3348_s8 = sld [smem:[#allocation38_spill]]  ;;  %s422_s20 = int_to_ptr.vmem [resolvable:$true] %s421_s20 }
  0x27   : > { %2384 = dma.hbm_to_vmem [thread:$0]  (!%p3035_p0), %s397_s21, 64, %s399_s22, [#allocation9]  }
  0x28   : > { %s2866_s19 = smov 256   ;;  %s2868_s14 = smov [#allocation14]  }
  0x29   : > { %s453_s13 = sshll.u32 %s2868_s14, 4  ;;  %s384_s28 = sshll.u32 %s3308_s2, 4  ;;  %s454_s13 = int_to_ptr.vmem [resolvable:$true] %s453_s13  ;;  %s385_s28 = int_to_ptr.hbm [resolvable:$true] %s384_s28 }
  0x2a   : > { %s419_s25 = sshll.u32 %s3346_s5, 4  ;;  %s2867_s5 = smov 16   ;;  %s420_s25 = int_to_ptr.hbm [resolvable:$true] %s419_s25 }
  0x2b   : > { %2390 = dma.hbm_to_vmem [thread:$0]  (!%p3035_p0), %s420_s25, 4096, %s422_s20, [#allocation12], %s2866_s19, %s2866_s19, %s2867_s5  }
  0x2c   : > { %s451_s29 = sshll.u32 %s3348_s8, 4  ;;  %s408_s21 = sshll.u32 %s3310_s4, 4  ;;  %s452_s29 = int_to_ptr.hbm [resolvable:$true] %s451_s29  ;;  %s409_s21 = int_to_ptr.hbm [resolvable:$true] %s408_s21 }
  0x2d   : > { %2396 = dma.hbm_to_vmem [thread:$0]  (!%p3035_p0), %s452_s29, 128, %s454_s13, [#allocation15]  }
  0x2e   : > { %s2869_s18 = smov [#allocation7]   ;;  %s2870_s5 = smov [#allocation10]  }
  0x2f   : > { %s386_s8 = sshll.u32 %s2869_s18, 4  ;;  %s410_s14 = sshll.u32 %s2870_s5, 4  ;;  %s387_s8 = int_to_ptr.vmem [resolvable:$true] %s386_s8  ;;  %s411_s14 = int_to_ptr.vmem [resolvable:$true] %s410_s14 }
  0x30   : > { %2381 = dma.hbm_to_vmem [thread:$0]  (!%p3035_p0), %s385_s28, 256, %s387_s8, [#allocation6]  }
  0x31   : > { %s436_s25 = sshll.u32 %s3313_s7, 4  ;;  %s2871_s13 = smov [#allocation13]   ;;  %s437_s25 = int_to_ptr.hbm [resolvable:$true] %s436_s25 }
  0x32   : > { %2387 = dma.hbm_to_vmem [thread:$0]  (!%p3035_p0), %s409_s21, 256, %s411_s14, [#allocation9]  }
  0x33   : > { %s438_s20 = sshll.u32 %s2871_s13, 4  ;;  %s465_s22 = sshll.u32 %s3316_s10, 4  ;;  %s439_s20 = int_to_ptr.vmem [resolvable:$true] %s438_s20  ;;  %s466_s22 = int_to_ptr.hbm [resolvable:$true] %s465_s22 }
  0x34   : > { %s2872_s8 = smov 128   ;;  %s2873_s28 = smov 8  }
  0x35   : > { %2393 = dma.hbm_to_vmem [thread:$0]  (!%p3035_p0), %s437_s25, 2048, %s439_s20, [#allocation12], %s2872_s8, %s2872_s8, %s2873_s28  }
  0x36   : > { %s2874_s3 = smov [#allocation16]   ;;  %s2875_s5 = smov 64  }
  0x37   : > { %s467_s18 = sshll.u32 %s2874_s3, 4  ;;  %s2876_s9 = smov 4   ;;  %s468_s18 = int_to_ptr.vmem [resolvable:$true] %s467_s18 }
  0x38   : > { %2399 = dma.hbm_to_vmem [thread:$0]  (!%p3035_p0), %s466_s22, 1024, %s468_s18, [#allocation15], %s2875_s5, %s2875_s5, %s2876_s9  }
  0x39   : > { %s482_s11 = sshll.u32 %s3318_s12, 4  ;;  %s2877_s13 = smov [#allocation17]   ;;  %s483_s11 = int_to_ptr.hbm [resolvable:$true] %s482_s11 }
  0x3a   : > { %s484_s29 = sshll.u32 %s2877_s13, 4  ;;  %p1957_p2 = scmp.ge.s32.totalorder %s2862_s16, 2  ;;  %s485_s29 = int_to_ptr.vmem [resolvable:$true] %s484_s29 }
  0x3b   : > { %2402 = dma.hbm_to_vmem [thread:$0]  (!%p3035_p0), %s483_s11, 1024, %s485_s29, [#allocation18], %s2875_s5, %s2875_s5, %s2876_s9  }
  0x3c   : > { %497 = sbr.rel (%p1957_p2) target bundleno = 91 (0x5b), region = 64  ;;  %s3077_s25 = sand.u32 (!%p1957_p2), 1, %s2858_s15  }
  0x3d   : > { %s2264_s20 = sshll.u32 (!%p1957_p2), %s2862_s16, 4  ;;  %s1958_s19 = sshll.u32 (!%p1957_p2), %s3077_s25, 4 }
  0x3e   : > { %s510_s28 = scalar_lea.hbm (!%p1957_p2), %s3306_s0, %s2264_s20  ;;  %s505_s3 = scalar_lea.vmem (!%p1957_p2), [#allocation2], %s1958_s19 }
  0x3f   : > { %s511_s26 = sshll.u32 (!%p1957_p2), %s510_s28, 4  ;;  %s513_s18 = sshll.u32 (!%p1957_p2), %s505_s3, 4  ;;  %s512_s26 = int_to_ptr.hbm [resolvable:$true] %s511_s26  ;;  %s514_s18 = int_to_ptr.vmem [resolvable:$true] %s513_s18 }
  0x40   : > { %s502_s5 = scalar_lea.sflag (!%p1957_p2), [#allocation3], %s3077_s25  ;;  %s2744_s9 = sshra.s32 (!%p1957_p2), %s512_s26, 4  ;;  %s2745_s9 = int_to_ptr.hbm [resolvable:$true] %s2744_s9 }
  0x41   : > { %s2746_s21 = scalar_lea.hbm %s2745_s9, 16  ;;  %s2750_s13 = scalar_lea.hbm %s3306_s0, 32 }
  0x42   : > { %p2747_p3 = scmp.ne.s32.totalorder %s2745_s9, %s2746_s21  ;;  %p2751_p9 = scmp.lt.s32.totalorder %s2745_s9, %s3306_s0 }
  0x43   : > { %p2752_p10 = scmp.lt.s32.totalorder %s2750_s13, %s2746_s21 }
  0x44   : > { %p2748_p7 = pnand %p2747_p3, %p3000_p5 }
  0x45   : > { %p2753_p1 = por %p2752_p10, %p2751_p9 }
  0x46   : > { %p2749_p8 = pneg %p2748_p7 }
  0x48   : > { %p2754_p0 = pnand %p2753_p1, %p2749_p8 }
  0x4a   : > { %2757 = shalt.err (!%p2754_p0)
}
  0x4b   : > { %s2878_s20 = smov 128   ;;  %s2879_s19 = smov 8  }
  0x4c   : > { %2349 = dma.hbm_to_vmem [thread:$0]  (%p3000_p5), %s512_s26, 256, %s514_s18, %s502_s5, %s2878_s20, %s2878_s20, %s2879_s19  }
  0x4d   : > { %s523_s8 = sand.u32 1, %s2862_s16   ;;  %s2331_s28 = smul.u32 24, %s3077_s25 }
  0x4e   : > { %s2266_s3 = sshll.u32 %s2862_s16, 5  ;;  %s2880_s29 = smov 256  }
  0x4f   : > { %s533_s14 = scalar_lea.hbm %s3307_s1, %s2266_s3  ;;  %s527_s26 = scalar_lea.vmem [#allocation5], %s2331_s28 }
  0x50   : > { %s2350_s11 = scalar_select %p3000_p5, [#allocation0], [#allocation22] }
  0x51   : > { %s546_s13 = sshll.u32 %s533_s14, 4  ;;  %s548_s18 = sshll.u32 %s527_s26, 4  ;;  %s547_s13 = int_to_ptr.hbm [resolvable:$true] %s546_s13  ;;  %s549_s18 = int_to_ptr.vmem [resolvable:$true] %s548_s18 }
  0x52   : > { %s538_s5 = sld [smem:[%s2350_s11]]   ;;  %s2881_s25 = smov 192  }
  0x53   : > { %2351 = sst [smem:[#allocation21]] (%p3000_p5), %s2880_s29  ;;  %s2882_s22 = smov 3  }
  0x54   : > { %2352 = sst [smem:[#allocation21 + $0x1]] (%p3000_p5), %s2881_s25  ;;  %s2883_s20 = smov 64  }
  0x55   : > { %2353 = sst [smem:[#allocation21 + $0x2]] (%p3000_p5), %s2882_s22  ;;  %s2884_s3 = smov 4  }
  0x56   : > { %2354 = sst [smem:[#allocation21 + $0x3]] (%p3000_p5), %s2883_s20  ;;  %s524_s9 = scalar_lea.sflag [#allocation6], %s523_s8 }
  0x57   : > { %2355 = sst [smem:[#allocation21 + $0x4]] (%p3000_p5), %s2883_s20  ;;  %s2885_s21 = smov [#allocation20]  }
  0x58   : > { %s1964_s19 = sshll.u32 %s538_s5, 26  ;;  %2356 = sst [smem:[#allocation21 + $0x5]] (%p3000_p5), %s2884_s3 }
  0x59   : > { %s1965_s28 = sadd.s32 134217728, %s1964_s19 }
  0x5a   : > { %2357 = dma.general (%p3000_p5), %s547_s13, 384, %s549_s18, %s524_s9, %s2885_s21, [#allocation21], %s1965_s28, 0  }
  0x5b PF: > { %573 = sbr.rel (%p3021_p13) target bundleno = 1192 (0x4a8), region = 76  ;;  %s3120_s14 = sand.u32 (!%p3021_p13), 1, %s2854_s30  }
  0x5c   : > { %s1967_s11 = sshll.u32 (!%p3021_p13), %s3120_s14, 4  ;;  %s576_s26 = scalar_lea.sflag (!%p3021_p13), [#allocation3], %s3120_s14 }
  0x5d   : > { %s579_s5 = scalar_lea.vmem (!%p3021_p13), [#allocation2], %s1967_s11 }
  0x60   : > { %2817 = dma.done.wait (%p3006_p6), %s576_s26, 256  }
  0x61   : > { %2819 = vsyncadd (%p3006_p6), %s576_s26, 4294967040  ;;  %s585_s23 = sand.u32 1, %s2982_s17   ;;  %s2332_s27 = smul.u32 24, %s3120_s14 }
  0x62   : > { %s586_s8 = scalar_lea.sflag [#allocation6], %s585_s23 }
  0x63   : > { %s3130_s13 = scalar_lea.vmem [#allocation5], %s2332_s27 }
  0x64   : > { %2821 = dma.done.wait (%p3006_p6), %s586_s8, 384  }
  0x65   : > { %2823 = vsyncadd (%p3006_p6), %s586_s8, 4294966912 }
  0x66   : > { %2825 = dma.done.wait (%p58_p4), [#allocation6], 256  }
  0x67   : > { %2827 = vsyncadd (%p58_p4), [#allocation6], 4294967040 }
  0x68   : > { %2829 = dma.done.wait (%p58_p4), [#allocation9], 320  }
  0x69   : > { %2831 = vsyncadd (%p58_p4), [#allocation9], 4294966976 }
  0x6a   : > { %2833 = dma.done.wait (%p58_p4), [#allocation12], 6144  }
  0x6b   : > { %2835 = vsyncadd (%p58_p4), [#allocation12], 4294961152 }
  0x6c   : > { %2837 = dma.done.wait (%p58_p4), [#allocation15], 1152  }
  0x6d   : > { %2839 = vsyncadd (%p58_p4), [#allocation15], 4294966144 }
  0x6e   : > { %2841 = dma.done.wait (%p58_p4), [#allocation18], 1024  }
  0x6f   : > { %2843 = vsyncadd (%p58_p4), [#allocation18], 4294966272  ;;  %v686_v0 = vld [vmem:[#allocation7] sm:$0xff]  ;;  %v687_v1 = vld [vmem:[#allocation7 + $0x8] sm:$0xff]  ;;  %vm712_vm0 = vcmask 1043456   ;;  %vm708_vm1 = vcmask 64512  }
  0x70   : > { %v700_v2 = vunpack.c.l.b16 %v686_v0  ;;  %v701_v3 = vunpack.c.h.b16 %v686_v0  ;;  %v702_v4 = vunpack.c.l.b16 %v687_v1  ;;  %v683_v5 = vld [vmem:[%s579_s5] sm:$0xff]  ;;  %v684_v6 = vld [vmem:[%s579_s5 + $0x8] sm:$0xff]  ;;  %v703_v7 = vunpack.c.h.b16 %v687_v1  ;;  %v3202_v51 = vld [vmem:[%s3130_s13 + $0x10] sm:$0xf]  ;;  %s3349_s22 = sld [smem:[#allocation39_spill]]  ;;  %s1976_s11 = sshll.u32 %s3120_s14, 1 }
  0x71   : > { %v3156_v12 = vpack.c.bf16 %v684_v6, %v683_v5  ;;  %v3170_v17 = vld [vmem:[#allocation8] sm:$0xf]  ;;  %v3183_v38 = vld [vmem:[%s3130_s13 + $0x4] sm:$0xf]  ;;  %v3193_v44 = vld [vmem:[%s3130_s13 + $0xc] sm:$0xf] }
  0x72   : > { %v704_v8 = vpack.c.b16 %v700_v2, %v700_v2  ;;  %v705_v9 = vpack.c.b16 %v701_v3, %v701_v3  ;;  %v706_v10 = vpack.c.b16 %v702_v4, %v702_v4  ;;  %v707_v11 = vpack.c.b16 %v703_v7, %v703_v7  ;;  %v3177_v28 = vld [vmem:[%s3130_s13] sm:$0xf]  ;;  %v3190_v43 = vld [vmem:[%s3130_s13 + $0x8] sm:$0xf]  ;;  %v3207_v52 = vld [vmem:[%s3130_s13 + $0x14] sm:$0xf] }
  0x73   : > { %v690_v18 = vperm.slane %v3170_v17, 0  ;;  %v691_v19 = vperm.slane %v3170_v17, 1  ;;  %v692_v25 = vperm.slane %v3170_v17, 2  ;;  %v2106_v53 = vld [vmem:[#allocation11 + $0xe0] sm:$0xf]  ;;  %vm1612_vm2 = vcmask 1041409  }
  0x74   : > { %v714_v13 = vsel %vm712_vm0, %v704_v8, 0  ;;  %v717_v14 = vsel %vm712_vm0, %v705_v9, 0  ;;  %v720_v15 = vsel %vm712_vm0, %v706_v10, 0  ;;  %v723_v16 = vsel %vm712_vm0, %v707_v11, 0  ;;  %v2297_v54 = vld [vmem:[#allocation11 + $0xec] sm:$0xf0] }
  0x75   : > { %732 = vmatpush.bf16.msra.mxu0 %v714_v13  ;;  %746 = vmatpush.bf16.msra.mxu1 %v717_v14  ;;  %v2295_v55 = vld [vmem:[#allocation11 + $0xe4] sm:$0xf]  ;;  %v2107_v56 = vor.u32 %v2297_v54, %v2106_v53  ;;  %v2108_v57 = vld [vmem:[#allocation11 + $0xf0] sm:$0xf0]  ;;  %v2114_v58 = vld [vmem:[#allocation11 + $0xe8] sm:$0xf] }
  0x76   : > { %760 = vmatpush.bf16.msra.mxu2 %v720_v15  ;;  %774 = vmatpush.bf16.msra.mxu3 %v723_v16  ;;  %v2298_v59 = vld [vmem:[#allocation11 + $0xf4] sm:$0xf0]  ;;  %v2111_v60 = vor.u32 %v2295_v55, %v2108_v57  ;;  %v2296_v62 = vld [vmem:[#allocation11 + $0xec] sm:$0xf]  ;;  %v2116_v63 = vld [vmem:[#allocation11 + $0xf8] sm:$0xf0] }
  0x77   : > { %v2115_v61 = vor.u32 %v2298_v59, %v2114_v58  ;;  %v2119_v0 = vor.u32 %v2296_v62, %v2116_v63  ;;  %v2090_v1 = vld [vmem:[#allocation11 + $0xc0] sm:$0xf]  ;;  %v2293_v2 = vld [vmem:[#allocation11 + $0xcc] sm:$0xf0]  ;;  %v2291_v3 = vld [vmem:[#allocation11 + $0xc4] sm:$0xf] }
  0x78   : > { %1977 = vmatmul.msk.bf16.vlgmr.msra.gmra.mxu0 %vm708_vm1, %v3156_v12  ;;  %1978 = vmatmul.msk.bf16.vlgmr.msra.gmra.mxu1 %vm708_vm1, %v3156_v12  ;;  %v2091_v4 = vor.u32 %v2293_v2, %v2090_v1  ;;  %v2092_v5 = vld [vmem:[#allocation11 + $0xd0] sm:$0xf0]  ;;  %v2098_v6 = vld [vmem:[#allocation11 + $0xc8] sm:$0xf]  ;;  %v2294_v7 = vld [vmem:[#allocation11 + $0xd4] sm:$0xf0] }
  0x79   : > { %1979 = vmatmul.msk.bf16.vlgmr.msra.gmra.mxu2 %vm708_vm1, %v3156_v12  ;;  %1980 = vmatmul.msk.bf16.vlgmr.msra.gmra.mxu3 %vm708_vm1, %v3156_v12  ;;  %v2095_v8 = vor.u32 %v2291_v3, %v2092_v5  ;;  %v2099_v9 = vor.u32 %v2294_v7, %v2098_v6  ;;  %v2292_v10 = vld [vmem:[#allocation11 + $0xcc] sm:$0xf]  ;;  %v2100_v11 = vld [vmem:[#allocation11 + $0xd8] sm:$0xf0]  ;;  %v2074_v14 = vld [vmem:[#allocation11 + $0xa0] sm:$0xf] }
  0x7a   : > { %v2103_v13 = vor.u32 %v2292_v10, %v2100_v11  ;;  %v2289_v15 = vld [vmem:[#allocation11 + $0xac] sm:$0xf0]  ;;  %v2287_v16 = vld [vmem:[#allocation11 + $0xa4] sm:$0xf]  ;;  %v2280_v54 = vld [vmem:[#allocation11 + $0x6c] sm:$0xf] }
  0x7b   : > { %v2052_v55 = vld [vmem:[#allocation11 + $0x78] sm:$0xf0]  ;;  %v2026_v57 = vld [vmem:[#allocation11 + $0x40] sm:$0xf]  ;;  %v2277_v58 = vld [vmem:[#allocation11 + $0x4c] sm:$0xf0] }
  0x7c   : > { %v2275_v59 = vld [vmem:[#allocation11 + $0x44] sm:$0xf]  ;;  %v2034_v62 = vld [vmem:[#allocation11 + $0x48] sm:$0xf]  ;;  %v2278_v63 = vld [vmem:[#allocation11 + $0x54] sm:$0xf0] }
  0x7d   : > { %v2035_v1 = vor.u32 %v2278_v63, %v2034_v62  ;;  %v2276_v2 = vld [vmem:[#allocation11 + $0x4c] sm:$0xf]  ;;  %v2036_v3 = vld [vmem:[#allocation11 + $0x58] sm:$0xf0]  ;;  %v2010_v5 = vld [vmem:[#allocation11 + $0x20] sm:$0xf] }
  0x7e   : > { %v2273_v6 = vld [vmem:[#allocation11 + $0x2c] sm:$0xf0]  ;;  %v2271_v7 = vld [vmem:[#allocation11 + $0x24] sm:$0xf]  ;;  %v2018_v10 = vld [vmem:[#allocation11 + $0x28] sm:$0xf] }
  0x7f   : > { %v2274_v11 = vld [vmem:[#allocation11 + $0x34] sm:$0xf0]  ;;  %s3350_s28 = sld [smem:[#allocation40_spill]]  ;;  %s2261_s26 = sshll.u32 %s2982_s17, 1 }
  0x80   : > { %s3351_s21 = sld [smem:[#allocation41_spill]]  ;;  %s679_s24 = scalar_lea.vmem [#allocation19], %s1976_s11 }
  0x81   : > { %s3352_s27 = sld [smem:[#allocation42_spill]]  ;;  %s1775_s18 = sshll.u32 %s679_s24, 4  ;;  %s1776_s18 = int_to_ptr.vmem [resolvable:$true] %s1775_s18 }
  0x82   : > { %s1763_s25 = scalar_lea.sflag [#allocation4], %s3120_s14 }
  0x87   : > { %s1773_s13 = scalar_lea.hbm %s3352_s27, %s2261_s26 }
  0x88   : > { %s1777_s29 = sshll.u32 %s1773_s13, 4  ;;  %s1778_s29 = int_to_ptr.hbm [resolvable:$true] %s1777_s29 }
  0xf5   : > { %v734_v20 = vpop.f32.mrf.mxu0  ;;  %v748_v21 = vpop.f32.mrf.mxu1 }
  0xf6   : > { %v735_v22 = vadd.f32 %v734_v20, %v690_v18  ;;  %v749_v23 = vadd.f32 %v748_v21, %v691_v19  ;;  %v2082_v20 = vld [vmem:[#allocation11 + $0xa8] sm:$0xf]  ;;  %v2290_v21 = vld [vmem:[#allocation11 + $0xb4] sm:$0xf0] }
  0xf8   : > { %v781_v24 = vpack.c.bf16 %v749_v23, %v735_v22  ;;  %v2083_v23 = vor.u32 %v2290_v21, %v2082_v20  ;;  %v2269_v20 = vld [vmem:[#allocation11 + $0xc] sm:$0xf0]  ;;  %v2267_v21 = vld [vmem:[#allocation11 + $0x4] sm:$0xf] }
  0xfa   : > { %v790_v26 = vsel %vm712_vm0, %v781_v24, 0  ;;  %v809_v27 = vunpack.c.h.b16 %v781_v24  ;;  %v2288_v24 = vld [vmem:[#allocation11 + $0xac] sm:$0xf] }
  0xfb   : > { %799 = vmatpush.bf16.msrb.mxu0 %v790_v26 }
  0xfc   : > { %v762_v29 = vpop.f32.mrf.mxu2  ;;  %v810_v30 = vpack.c.b16 %v809_v27, %v809_v27  ;;  %v2058_v27 = vld [vmem:[#allocation11 + $0x80] sm:$0xf] }
  0xfd   : > { %v763_v31 = vadd.f32 %v762_v29, %v692_v25  ;;  %v736_v32 = vpop.f32.mrf.mxu0  ;;  %v750_v33 = vpop.f32.mrf.mxu1  ;;  %v2285_v29 = vld [vmem:[#allocation11 + $0x8c] sm:$0xf0] }
  0xfe   : > { %v737_v34 = vadd.f32 %v736_v32, %v690_v18  ;;  %v751_v35 = vadd.f32 %v750_v33, %v691_v19  ;;  %1981 = vmatmul.msk.bf16.vlgmr.msrb.gmra.mxu0 %vm708_vm1, %v3177_v28  ;;  %v815_v36 = vsel %vm712_vm0, %v810_v30, 0  ;;  %v2075_v18 = vor.u32 %v2289_v15, %v2074_v14  ;;  %v2076_v19 = vld [vmem:[#allocation11 + $0xb0] sm:$0xf0]  ;;  %v2283_v30 = vld [vmem:[#allocation11 + $0x84] sm:$0xf] }
  0xff   : > { %v782_v37 = vpack.c.bf16 %v763_v31, %v763_v31  ;;  %824 = vmatpush.bf16.msrb.mxu1 %v815_v36  ;;  %v2079_v22 = vor.u32 %v2287_v16, %v2076_v19  ;;  %v2059_v31 = vor.u32 %v2285_v29, %v2058_v27  ;;  %v2060_v32 = vld [vmem:[#allocation11 + $0x90] sm:$0xf0]  ;;  %v2066_v33 = vld [vmem:[#allocation11 + $0x88] sm:$0xf]  ;;  %v2019_v14 = vor.u32 %v2274_v11, %v2018_v10  ;;  %v2272_v15 = vld [vmem:[#allocation11 + $0x2c] sm:$0xf] }
 0x100   : > { %v783_v39 = vpack.c.bf16 %v751_v35, %v737_v34  ;;  %v2286_v34 = vld [vmem:[#allocation11 + $0x94] sm:$0xf0]  ;;  %v2063_v35 = vor.u32 %v2283_v30, %v2060_v32  ;;  %v2020_v16 = vld [vmem:[#allocation11 + $0x38] sm:$0xf0]  ;;  %v1994_v19 = vld [vmem:[#allocation11] sm:$0xf] }
 0x101   : > { %v837_v40 = vsel %vm712_vm0, %v782_v37, 0  ;;  %v2067_v36 = vor.u32 %v2286_v34, %v2066_v33  ;;  %v2284_v37 = vld [vmem:[#allocation11 + $0x8c] sm:$0xf]  ;;  %v925_v34 = vld [vmem:[#allocation10] sm:$0xff] }
 0x102   : > { %846 = vmatpush.bf16.msrb.mxu2 %v837_v40  ;;  %1983 = vmatmul.msk.bf16.vlgmr.msrb.gmra.mxu1 %vm708_vm1, %v3183_v38  ;;  %v860_v41 = vsel %vm712_vm0, %v783_v39, 0  ;;  %v879_v42 = vunpack.c.h.b16 %v783_v39  ;;  %v2068_v39 = vld [vmem:[#allocation11 + $0x98] sm:$0xf0]  ;;  %v2268_v30 = vld [vmem:[#allocation11 + $0xc] sm:$0xf] }
 0x103   : > { %869 = vmatpush.bf16.msrb.mxu3 %v860_v41  ;;  %v2071_v40 = vor.u32 %v2284_v37, %v2068_v39  ;;  %v2042_v41 = vld [vmem:[#allocation11 + $0x60] sm:$0xf]  ;;  %v1178_v37 = vunpack.c.h.b16 %v925_v34 }
 0x104   : > { %v764_v45 = vpop.f32.mrf.mxu2  ;;  %v880_v46 = vpack.c.b16 %v879_v42, %v879_v42  ;;  %v2281_v42 = vld [vmem:[#allocation11 + $0x6c] sm:$0xf0] }
 0x105   : > { %v765_v47 = vadd.f32 %v764_v45, %v692_v25  ;;  %1985 = vmatmul.msk.bf16.vlgmr.msrb.gmra.mxu2 %vm708_vm1, %v3190_v43  ;;  %v2084_v25 = vld [vmem:[#allocation11 + $0xb8] sm:$0xf0]  ;;  %v2279_v45 = vld [vmem:[#allocation11 + $0x64] sm:$0xf] }
 0x106   : > { %1987 = vmatmul.msk.bf16.vlgmr.msrb.gmra.mxu3 %vm708_vm1, %v3193_v44  ;;  %v885_v48 = vsel %vm712_vm0, %v880_v46, 0  ;;  %1119 = vmatpush.bf16.msra.mxu2 %v2107_v56  ;;  %v2087_v26 = vor.u32 %v2288_v24, %v2084_v25  ;;  %v2043_v46 = vor.u32 %v2281_v42, %v2042_v41  ;;  %v2055_v56 = vor.u32 %v2280_v54, %v2052_v55  ;;  %v1996_v24 = vld [vmem:[#allocation11 + $0x10] sm:$0xf0]  ;;  %v2002_v25 = vld [vmem:[#allocation11 + $0x8] sm:$0xf] }
 0x107   : > { %v784_v49 = vpack.c.bf16 %v765_v47, %v765_v47  ;;  %894 = vmatpush.bf16.msra.mxu0 %v885_v48  ;;  %1133 = vmatpush.bf16.msra.mxu3 %v2111_v60  ;;  %v2044_v47 = vld [vmem:[#allocation11 + $0x70] sm:$0xf0]  ;;  %v2050_v48 = vld [vmem:[#allocation11 + $0x68] sm:$0xf]  ;;  %v2027_v60 = vor.u32 %v2277_v58, %v2026_v57  ;;  %v1999_v27 = vor.u32 %v2267_v21, %v1996_v24  ;;  %v693_v41 = vperm.slane %v3170_v17, 3 }
 0x109   : > { %v907_v50 = vsel %vm712_vm0, %v784_v49, 0  ;;  %v2282_v49 = vld [vmem:[#allocation11 + $0x74] sm:$0xf0] }
 0x10a   : > { %916 = vmatpush.bf16.msra.mxu1 %v907_v50  ;;  %1120 = vmatpush.bf16.msra.mxu2 %v2091_v4  ;;  %v2047_v50 = vor.u32 %v2279_v45, %v2044_v47  ;;  %v2051_v53 = vor.u32 %v2282_v49, %v2050_v48  ;;  %v2039_v4 = vor.u32 %v2276_v2, %v2036_v3 }
 0x10b   : > { %1147 = vmatpush.bf16.msrb.mxu0 %v2115_v61  ;;  %1134 = vmatpush.bf16.msra.mxu3 %v2095_v8  ;;  %v2028_v61 = vld [vmem:[#allocation11 + $0x50] sm:$0xf0]  ;;  %v2011_v8 = vor.u32 %v2273_v6, %v2010_v5 }
 0x10e   : > { %1989 = vmatmul.msk.bf16.vlgmr.msra.gmra.mxu0 %vm708_vm1, %v3202_v51  ;;  %1161 = vmatpush.bf16.msrb.mxu1 %v2119_v0  ;;  %v2031_v0 = vor.u32 %v2275_v59, %v2028_v61 }
 0x10f   : > { %1148 = vmatpush.bf16.msrb.mxu0 %v2099_v9  ;;  %1121 = vmatpush.bf16.msra.mxu2 %v2075_v18  ;;  %v2012_v9 = vld [vmem:[#allocation11 + $0x30] sm:$0xf0]  ;;  %v2023_v18 = vor.u32 %v2272_v15, %v2020_v16 }
 0x110   : > { %1135 = vmatpush.bf16.msra.mxu3 %v2079_v22  ;;  %v776_v22 = vpop.f32.mrf.mxu3 }
 0x112   : > { %1991 = vmatmul.msk.bf16.vlgmr.msra.gmra.mxu1 %vm708_vm1, %v3207_v52 }
 0x113   : > { %1162 = vmatpush.bf16.msrb.mxu1 %v2103_v13  ;;  %1149 = vmatpush.bf16.msrb.mxu0 %v2083_v23  ;;  %v2015_v13 = vor.u32 %v2271_v7, %v2012_v9  ;;  %v1995_v23 = vor.u32 %v2269_v20, %v1994_v19 }
 0x114   : > { %1122 = vmatpush.bf16.msra.mxu2 %v2059_v31  ;;  %1136 = vmatpush.bf16.msra.mxu3 %v2063_v35  ;;  %v2004_v31 = vld [vmem:[#allocation11 + $0x18] sm:$0xf0] }
 0x115   : > { %v2007_v32 = vor.u32 %v2268_v30, %v2004_v31  ;;  %v926_v35 = vld [vmem:[#allocation10 + $0x8] sm:$0xff] }
 0x116   : > { %v1179_v39 = vunpack.c.l.b16 %v926_v35 }
 0x117   : > { %1163 = vmatpush.bf16.msrb.mxu1 %v2087_v26  ;;  %1150 = vmatpush.bf16.msrb.mxu0 %v2067_v36  ;;  %v2270_v26 = vld [vmem:[#allocation11 + $0x14] sm:$0xf0]  ;;  %v1177_v36 = vunpack.c.l.b16 %v925_v34 }
 0x118   : > { %1123 = vmatpush.bf16.msra.mxu2 %v2043_v46  ;;  %1137 = vmatpush.bf16.msra.mxu3 %v2047_v50  ;;  %v2003_v29 = vor.u32 %v2270_v26, %v2002_v25  ;;  %v1182_v46 = vpack.c.b16 %v1178_v37, %v1178_v37  ;;  %v1183_v47 = vpack.c.b16 %v1179_v39, %v1179_v39  ;;  %v778_v49 = vpop.f32.mrf.mxu3 }
 0x119   : > { %v1181_v45 = vpack.c.b16 %v1177_v36, %v1177_v36  ;;  %v779_v59 = vadd.f32 %v778_v49, %v693_v41 }
 0x11a   : > { %v1192_v54 = vsel %vm712_vm0, %v1183_v47, 0 }
 0x11b   : > { %1164 = vmatpush.bf16.msrb.mxu1 %v2071_v40  ;;  %1151 = vmatpush.bf16.msrb.mxu0 %v2051_v53  ;;  %v1180_v40 = vunpack.c.h.b16 %v926_v35  ;;  %v1186_v50 = vsel %vm712_vm0, %v1181_v45, 0  ;;  %v1189_v53 = vsel %vm712_vm0, %v1182_v46, 0 }
 0x11c   : > { %1124 = vmatpush.bf16.msra.mxu2 %v2027_v60  ;;  %1138 = vmatpush.bf16.msra.mxu3 %v2031_v0 }
 0x11d   : > { %v1184_v48 = vpack.c.b16 %v1180_v40, %v1180_v40 }
 0x11f   : > { %1165 = vmatpush.bf16.msrb.mxu1 %v2055_v56  ;;  %1152 = vmatpush.bf16.msrb.mxu0 %v2035_v1  ;;  %v1195_v55 = vsel %vm712_vm0, %v1184_v48, 0  ;;  %v777_v56 = vadd.f32 %v776_v22, %v693_v41 }
 0x120   : > { %1125 = vmatpush.bf16.msra.mxu2 %v2011_v8  ;;  %1139 = vmatpush.bf16.msra.mxu3 %v2015_v13 }
 0x123   : > { %1166 = vmatpush.bf16.msrb.mxu1 %v2039_v4  ;;  %1153 = vmatpush.bf16.msrb.mxu0 %v2019_v14 }
 0x124   : > { %1126 = vmatpush.bf16.msra.mxu2 %v1995_v23  ;;  %1140 = vmatpush.bf16.msra.mxu3 %v1999_v27 }
 0x127   : > { %1167 = vmatpush.bf16.msrb.mxu1 %v2023_v18  ;;  %1154 = vmatpush.bf16.msrb.mxu0 %v2003_v29  ;;  %v3227_v18 = vld [vmem:[%s3312_s6] sm:$0xf] }
 0x128   : > { %1204 = vmatpush.bf16.msrb.mxu2 %v1186_v50  ;;  %1218 = vmatpush.bf16.msrb.mxu3 %v1189_v53  ;;  %v1257_v21 = vperm.slane %v3227_v18, 2  ;;  %v1255_v25 = vperm.slane %v3227_v18, 0  ;;  %v1256_v26 = vperm.slane %v3227_v18, 1 }
 0x12b   : > { %1168 = vmatpush.bf16.msrb.mxu1 %v2007_v32  ;;  %1232 = vmatpush.bf16.msra.mxu0 %v1192_v54 }
 0x12f   : > { %1246 = vmatpush.bf16.msra.mxu1 %v1195_v55 }
 0x17b   : > { %v801_v33 = vpop.f32.mrf.mxu0 }
 0x17c   : > { %v805_v17 = vadd.f32 %v801_v33, %v777_v56 }
 0x17f   : > { %v826_v42 = vpop.f32.mrf.mxu1 }
 0x180   : > { %v830_v63 = vadd.f32 %v826_v42, %v805_v17 }
 0x183   : > { %v803_v57 = vpop.f32.mrf.mxu0 }
 0x187   : > { %v828_v58 = vpop.f32.mrf.mxu1 }
 0x188   : > { %v848_v60 = vpop.f32.mrf.mxu2 }
 0x189   : > { %v871_v61 = vpop.f32.mrf.mxu3  ;;  %v852_v1 = vadd.f32 %v848_v60, %v830_v63  ;;  %v2314_v60 = vld [vmem:[#allocation13 + $0x74] sm:$0xf0]  ;;  %v2192_v63 = vld [vmem:[#allocation13 + $0x78] sm:$0xf0] }
 0x18a   : > { %v875_v62 = vadd.f32 %v871_v61, %v779_v59  ;;  %v2313_v61 = vld [vmem:[#allocation13 + $0x74] sm:$0xf] }
 0x18b   : > { %v896_v0 = vpop.f32.mrf.mxu0  ;;  %2480 = vtanh.f32 %v852_v1  ;;  %v2312_v1 = vld [vmem:[#allocation13 + $0x64] sm:$0xf0] }
 0x18c   : > { %v900_v2 = vadd.f32 %v896_v0, %v875_v62  ;;  %v2195_v0 = vor.u32 %v2313_v61, %v2192_v63 }
 0x18f   : > { %v918_v3 = vpop.f32.mrf.mxu1 }
 0x190   : > { %v850_v4 = vpop.f32.mrf.mxu2  ;;  %v922_v5 = vadd.f32 %v918_v3, %v900_v2  ;;  %v2311_v2 = vld [vmem:[#allocation13 + $0x64] sm:$0xf] }
 0x191   : > { %v873_v6 = vpop.f32.mrf.mxu3  ;;  %v2481_v8 = vpop.eup %2480  ;;  %v2184_v4 = vld [vmem:[#allocation13 + $0x68] sm:$0xf0] }
 0x192   : > { %2482 = vtanh.f32 %v922_v5  ;;  %v2187_v5 = vor.u32 %v2311_v2, %v2184_v4  ;;  %v2310_v6 = vld [vmem:[#allocation13 + $0x54] sm:$0xf0] }
 0x193   : > { %v898_v7 = vpop.f32.mrf.mxu0 }
 0x194   : > { %v2309_v7 = vld [vmem:[#allocation13 + $0x54] sm:$0xf] }
 0x197   : > { %v920_v9 = vpop.f32.mrf.mxu1 }
 0x198   : > { %v2483_v10 = vpop.eup %2482  ;;  %v2176_v9 = vld [vmem:[#allocation13 + $0x58] sm:$0xf0] }
 0x199   : > { %v924_v11 = vpack.c.bf16 %v2483_v10, %v2481_v8  ;;  %v2179_v10 = vor.u32 %v2309_v7, %v2176_v9 }
 0x19b   : > { %1127 = vmatmul.bf16.vlgmr.msra.gmra.mxu2 %v924_v11  ;;  %1141 = vmatmul.bf16.vlgmr.msra.gmra.mxu3 %v924_v11 }
 0x19c   : > { %1155 = vmatmul.bf16.vlgmr.msrb.gmra.mxu0 %v924_v11  ;;  %1169 = vmatmul.bf16.vlgmr.msrb.gmra.mxu1 %v924_v11  ;;  %v2166_v11 = vld [vmem:[#allocation13 + $0x40] sm:$0xf] }
 0x1ab   : > { %2120 = vmatmul.msk.bf16.vlgmr.msrb.gmra.mxu2 %vm708_vm1, %v3156_v12  ;;  %2121 = vmatmul.msk.bf16.vlgmr.msrb.gmra.mxu3 %vm708_vm1, %v3156_v12 }
 0x1ac   : > { %2122 = vmatmul.msk.bf16.vlgmr.msra.gmra.mxu0 %vm708_vm1, %v3156_v12  ;;  %2123 = vmatmul.msk.bf16.vlgmr.msra.gmra.mxu1 %vm708_vm1, %v3156_v12 }
 0x219   : > { %v1156_v13 = vpop.f32.mrf.mxu0  ;;  %v3250_v59 = vpop.f32.mrf.mxu1 }
 0x21e   : > { %v1128_v14 = vpop.f32.mrf.mxu2  ;;  %v1142_v15 = vpop.f32.mrf.mxu3 }
 0x221   : > { %v1158_v16 = vpop.f32.mrf.mxu0 }
 0x226   : > { %v1130_v19 = vpop.f32.mrf.mxu2  ;;  %v1144_v20 = vpop.f32.mrf.mxu3 }
 0x229   : > { %v1234_v22 = vpop.f32.mrf.mxu0 }
 0x22a   : > { %v1235_v23 = vadd.f32 %v1234_v22, %v1156_v13  ;;  %v2308_v13 = vld [vmem:[#allocation13 + $0x44] sm:$0xf0]  ;;  %v2305_v22 = vld [vmem:[#allocation13 + $0x34] sm:$0xf] }
 0x22c   : > { %v1265_v24 = vadd.f32 %v1257_v21, %v1235_v23 }
 0x22e   : > { %v1272_v27 = vpack.c.bf16 %v1265_v24, %v1265_v24  ;;  %v1206_v29 = vpop.f32.mrf.mxu2  ;;  %v1220_v30 = vpop.f32.mrf.mxu3 }
 0x22f   : > { %v1207_v31 = vadd.f32 %v1206_v29, %v1128_v14  ;;  %v1221_v32 = vadd.f32 %v1220_v30, %v1142_v15  ;;  %v2307_v14 = vld [vmem:[#allocation13 + $0x44] sm:$0xf]  ;;  %v2167_v15 = vor.u32 %v2308_v13, %v2166_v11  ;;  %v2304_v29 = vld [vmem:[#allocation13 + $0x24] sm:$0xf0] }
 0x230   : > { %v1313_v33 = vsel %vm712_vm0, %v1272_v27, 0  ;;  %v2150_v27 = vld [vmem:[#allocation13 + $0x20] sm:$0xf]  ;;  %v2303_v30 = vld [vmem:[#allocation13 + $0x24] sm:$0xf] }
 0x231   : > { %v1263_v34 = vadd.f32 %v1255_v25, %v1207_v31  ;;  %v1264_v35 = vadd.f32 %v1256_v26, %v1221_v32  ;;  %v1236_v36 = vpop.f32.mrf.mxu0  ;;  %1322 = vmatpush.bf16.msrb.mxu0 %v1313_v33  ;;  %v2151_v31 = vor.u32 %v2304_v29, %v2150_v27  ;;  %v2152_v32 = vld [vmem:[#allocation13 + $0x28] sm:$0xf0] }
 0x232   : > { %v1237_v37 = vadd.f32 %v1236_v36, %v1158_v16  ;;  %v2168_v16 = vld [vmem:[#allocation13 + $0x48] sm:$0xf0]  ;;  %v2142_v36 = vld [vmem:[#allocation13 + $0x10] sm:$0xf] }
 0x233   : > { %v1271_v39 = vpack.c.bf16 %v1264_v35, %v1263_v34  ;;  %v2155_v34 = vor.u32 %v2303_v30, %v2152_v32  ;;  %v1402_v35 = vld [vmem:[#allocation14] sm:$0xff] }
 0x234   : > { %v1269_v40 = vadd.f32 %v1257_v21, %v1237_v37  ;;  %2126 = vmatmul.msk.bf16.vlgmr.msrb.gmra.mxu0 %vm708_vm1, %v3190_v43  ;;  %v2306_v21 = vld [vmem:[#allocation13 + $0x34] sm:$0xf0]  ;;  %v2318_v30 = vld [vmem:[#allocation16 + $0x18] sm:$0xff] }
 0x235   : > { %v1276_v41 = vsel %vm712_vm0, %v1271_v39, 0  ;;  %v1293_v42 = vunpack.c.h.b16 %v1271_v39  ;;  %v2302_v37 = vld [vmem:[#allocation13 + $0x14] sm:$0xf0]  ;;  %v2301_v39 = vld [vmem:[#allocation13 + $0x14] sm:$0xf] }
 0x236   : > { %v1274_v45 = vpack.c.bf16 %v1269_v40, %v1269_v40  ;;  %v1208_v46 = vpop.f32.mrf.mxu2  ;;  %v1222_v47 = vpop.f32.mrf.mxu3  ;;  %1285 = vmatpush.bf16.msra.mxu2 %v1276_v41  ;;  %v1404_v40 = vunpack.c.l.b16 %v1402_v35  ;;  %v2143_v41 = vor.u32 %v2302_v37, %v2142_v36  ;;  %v2317_v36 = vld [vmem:[#allocation16 + $0x10] sm:$0xff] }
 0x237   : > { %v1209_v48 = vadd.f32 %v1208_v46, %v1130_v19  ;;  %v1223_v49 = vadd.f32 %v1222_v47, %v1144_v20  ;;  %v1294_v50 = vpack.c.b16 %v1293_v42, %v1293_v42  ;;  %v2171_v19 = vor.u32 %v2307_v14, %v2168_v16  ;;  %v2158_v20 = vld [vmem:[#allocation13 + $0x30] sm:$0xf]  ;;  %v2144_v42 = vld [vmem:[#allocation13 + $0x18] sm:$0xf0]  ;;  %v2300_v46 = vld [vmem:[#allocation13 + $0x4] sm:$0xf0] }
 0x238   : > { %v1368_v43 = vsel %vm712_vm0, %v1274_v45, 0  ;;  %v2159_v24 = vor.u32 %v2306_v21, %v2158_v20  ;;  %v2134_v45 = vld [vmem:[#allocation13] sm:$0xf]  ;;  %v2147_v47 = vor.u32 %v2301_v39, %v2144_v42  ;;  %v2321_v14 = vld [vmem:[#allocation16 + $0x30] sm:$0xff]  ;;  %v2316_v42 = vld [vmem:[#allocation16 + $0x8] sm:$0xff] }
 0x239   : > { %v1267_v53 = vadd.f32 %v1255_v25, %v1209_v48  ;;  %v1268_v54 = vadd.f32 %v1256_v26, %v1223_v49  ;;  %2124 = vmatmul.msk.bf16.vlgmr.msra.gmra.mxu2 %vm708_vm1, %v3177_v28  ;;  %v1296_v55 = vsel %vm712_vm0, %v1294_v50, 0  ;;  %v2160_v25 = vld [vmem:[#allocation13 + $0x38] sm:$0xf0]  ;;  %v2299_v48 = vld [vmem:[#allocation13 + $0x4] sm:$0xf]  ;;  %v1406_v50 = vpack.c.b16 %v1404_v40, %v1404_v40 }
 0x23a   : > { %1305 = vmatpush.bf16.msra.mxu3 %v1296_v55  ;;  %v2163_v26 = vor.u32 %v2305_v22, %v2160_v25  ;;  %v2136_v49 = vld [vmem:[#allocation13 + $0x8] sm:$0xf0] }
 0x23b   : > { %v1273_v56 = vpack.c.bf16 %v1268_v54, %v1267_v53  ;;  %v2135_v54 = vor.u32 %v2300_v46, %v2134_v45  ;;  %v2139_v55 = vor.u32 %v2299_v48, %v2136_v49  ;;  %v2319_v25 = vld [vmem:[#allocation16 + $0x20] sm:$0xff] }
 0x23d   : > { %2125 = vmatmul.msk.bf16.vlgmr.msra.gmra.mxu3 %vm708_vm1, %v3183_v38  ;;  %v1331_v57 = vsel %vm712_vm0, %v1273_v56, 0  ;;  %v1348_v17 = vunpack.c.h.b16 %v1273_v56  ;;  %v2190_v38 = vld [vmem:[#allocation13 + $0x70] sm:$0xf] }
 0x23e   : > { %1377 = vmatpush.bf16.msrb.mxu3 %v1368_v43  ;;  %1340 = vmatpush.bf16.msrb.mxu1 %v1331_v57  ;;  %v2191_v62 = vor.u32 %v2314_v60, %v2190_v38  ;;  %v1409_v43 = vsel %vm712_vm0, %v1406_v50, 0  ;;  %v1405_v57 = vunpack.c.h.b16 %v1402_v35  ;;  %v2315_v50 = vld [vmem:[#allocation16] sm:$0xff] }
 0x23f   : > { %v1349_v58 = vpack.c.b16 %v1348_v17, %v1348_v17  ;;  %1421 = vmatpush.bf16.msra.mxu0 %v1409_v43 }
 0x240   : > { %v1407_v17 = vpack.c.b16 %v1405_v57, %v1405_v57 }
 0x241   : > { %2127 = vmatmul.msk.bf16.vlgmr.msrb.gmra.mxu1 %vm708_vm1, %v3193_v44  ;;  %v1351_v28 = vsel %vm712_vm0, %v1349_v58, 0  ;;  %v2182_v44 = vld [vmem:[#allocation13 + $0x60] sm:$0xf] }
 0x242   : > { %1360 = vmatpush.bf16.msrb.mxu2 %v1351_v28  ;;  %1536 = vmatpush.bf16.msra.mxu3 %v2195_v0  ;;  %v2183_v3 = vor.u32 %v2312_v1, %v2182_v44  ;;  %v1412_v28 = vsel %vm712_vm0, %v1407_v17, 0  ;;  %v2330_v17 = vld [vmem:[#allocation17 + $0x38] sm:$0xff] }
 0x243   : > { %1435 = vmatpush.bf16.msra.mxu1 %v1412_v28 }
 0x244   : > { %2130 = vmatmul.msk.bf16.vlgmr.msra.gmra.mxu0 %vm708_vm1, %v3156_v12 }
 0x246   : > { %1522 = vmatpush.bf16.msra.mxu2 %v2191_v62  ;;  %1537 = vmatpush.bf16.msra.mxu3 %v2187_v5  ;;  %v1258_v62 = vperm.slane %v3227_v18, 3 }
 0x247   : > { %1747 = vmatpush.bf16.msrb.mxu1 %v2330_v17 }
 0x249   : > { %2128 = vmatmul.msk.bf16.vlgmr.msrb.gmra.mxu2 %vm708_vm1, %v3202_v51  ;;  %v3252_v51 = vpop.f32.mrf.mxu1 }
 0x24a   : > { %1523 = vmatpush.bf16.msra.mxu2 %v2183_v3  ;;  %1538 = vmatpush.bf16.msra.mxu3 %v2179_v10 }
 0x24d   : > { %2129 = vmatmul.msk.bf16.vlgmr.msrb.gmra.mxu3 %vm708_vm1, %v3207_v52  ;;  %v2174_v52 = vld [vmem:[#allocation13 + $0x50] sm:$0xf] }
 0x24e   : > { %v2175_v8 = vor.u32 %v2310_v6, %v2174_v52  ;;  %1539 = vmatpush.bf16.msra.mxu3 %v2171_v19  ;;  %v2320_v19 = vld [vmem:[#allocation16 + $0x28] sm:$0xff] }
 0x250   : > { %1524 = vmatpush.bf16.msra.mxu2 %v2175_v8 }
 0x251   : > { %v1248_v23 = vpop.f32.mrf.mxu1  ;;  %2131 = vmatmul.msk.bf16.vlgmr.msra.gmra.mxu1 %vm708_vm1, %v3156_v12 }
 0x252   : > { %1540 = vmatpush.bf16.msra.mxu3 %v2163_v26  ;;  %v1249_v61 = vadd.f32 %v1248_v23, %v3250_v59 }
 0x254   : > { %1525 = vmatpush.bf16.msra.mxu2 %v2167_v15  ;;  %v1266_v0 = vadd.f32 %v1258_v62, %v1249_v61  ;;  %v1550_v15 = vld [vmem:[%s3349_s22] sm:$0x3]  ;;  %s2786_s22 = sshra.s32 %s1778_s29, 4  ;;  %s2787_s22 = int_to_ptr.hbm [resolvable:$true] %s2786_s22 }
 0x255   : > { %v1552_v21 = vperm.slane %v1550_v15, 0  ;;  %v1553_v29 = vperm.slane %v1550_v15, 1  ;;  %v2323_v15 = vld [vmem:[#allocation17] sm:$0xff]  ;;  %s2788_s17 = scalar_lea.hbm %s2787_s22, 2  ;;  %p2793_p13 = scmp.lt.s32.totalorder %s2787_s22, %s3352_s27 }
 0x256   : > { %1541 = vmatpush.bf16.msra.mxu3 %v2155_v34  ;;  %p2789_p4 = scmp.ne.s32.totalorder %s2787_s22, %s2788_s17 }
 0x258   : > { %1526 = vmatpush.bf16.msra.mxu2 %v2159_v24  ;;  %p2790_p5 = pnand %p2789_p4, %p3013_p11 }
 0x259   : > { %v1250_v53 = vpop.f32.mrf.mxu1 }
 0x25a   : > { %1542 = vmatpush.bf16.msra.mxu3 %v2147_v47  ;;  %v1251_v1 = vadd.f32 %v1250_v53, %v3252_v51  ;;  %v2322_v51 = vld [vmem:[#allocation16 + $0x38] sm:$0xff]  ;;  %p2791_p6 = pneg %p2790_p5 }
 0x25b   : > { %1664 = vmatpush.bf16.msrb.mxu0 %v2322_v51  ;;  %v2325_v51 = vld [vmem:[#allocation17 + $0x10] sm:$0xff] }
 0x25c   : > { %1527 = vmatpush.bf16.msra.mxu2 %v2151_v31  ;;  %v1270_v5 = vadd.f32 %v1258_v62, %v1251_v1 }
 0x25e   : > { %1543 = vmatpush.bf16.msra.mxu3 %v2139_v55 }
 0x25f   : > { %1665 = vmatpush.bf16.msrb.mxu0 %v2321_v14  ;;  %v2324_v14 = vld [vmem:[#allocation17 + $0x8] sm:$0xff] }
 0x260   : > { %1528 = vmatpush.bf16.msra.mxu2 %v2143_v41 }
 0x263   : > { %1666 = vmatpush.bf16.msrb.mxu0 %v2320_v19 }
 0x264   : > { %1529 = vmatpush.bf16.msra.mxu2 %v2135_v54 }
 0x267   : > { %1667 = vmatpush.bf16.msrb.mxu0 %v2319_v25 }
 0x26b   : > { %1668 = vmatpush.bf16.msrb.mxu0 %v2318_v30 }
 0x26f   : > { %1669 = vmatpush.bf16.msrb.mxu0 %v2317_v36 }
 0x273   : > { %1670 = vmatpush.bf16.msrb.mxu0 %v2316_v42 }
 0x277   : > { %1671 = vmatpush.bf16.msrb.mxu0 %v2315_v50 }
 0x2b1   : > { %v1324_v33 = vpop.f32.mrf.mxu0 }
 0x2b9   : > { %v1326_v56 = vpop.f32.mrf.mxu0 }
 0x2bc   : > { %v1287_v58 = vpop.f32.mrf.mxu2 }
 0x2bd   : > { %v1291_v2 = vadd.f32 %v1287_v58, %v1266_v0 }
 0x2be   : > { %v1342_v38 = vpop.f32.mrf.mxu1 }
 0x2bf   : > { %v1346_v6 = vadd.f32 %v1342_v38, %v1270_v5  ;;  %v2329_v38 = vld [vmem:[#allocation17 + $0x30] sm:$0xff] }
 0x2c0   : > { %v1307_v60 = vpop.f32.mrf.mxu3  ;;  %1748 = vmatpush.bf16.msrb.mxu1 %v2329_v38 }
 0x2c1   : > { %v1311_v4 = vadd.f32 %v1307_v60, %v1291_v2  ;;  %v1423_v16 = vpop.f32.mrf.mxu0 }
 0x2c3   : > { %v1328_v7 = vadd.f32 %v1324_v33, %v1311_v4  ;;  %v2327_v4 = vld [vmem:[#allocation17 + $0x20] sm:$0xff] }
 0x2c4   : > { %v1289_v63 = vpop.f32.mrf.mxu2 }
 0x2c5   : > { %2484 = vtanh.f32 %v1328_v7 }
 0x2c6   : > { %v1344_v44 = vpop.f32.mrf.mxu1 }
 0x2c7   : > { %v2328_v44 = vld [vmem:[#allocation17 + $0x28] sm:$0xff] }
 0x2c8   : > { %v1309_v3 = vpop.f32.mrf.mxu3  ;;  %1749 = vmatpush.bf16.msrb.mxu1 %v2328_v44 }
 0x2c9   : > { %v1425_v33 = vpop.f32.mrf.mxu0 }
 0x2cb   : > { %v2485_v59 = vpop.eup %2484 }
 0x2cc   : > { %v1362_v52 = vpop.f32.mrf.mxu2  ;;  %1750 = vmatpush.bf16.msrb.mxu1 %v2327_v4 }
 0x2cd   : > { %v1366_v8 = vadd.f32 %v1362_v52, %v1346_v6  ;;  %v2326_v6 = vld [vmem:[#allocation17 + $0x18] sm:$0xff] }
 0x2ce   : > { %v1437_v20 = vpop.f32.mrf.mxu1 }
 0x2d0   : > { %v1379_v9 = vpop.f32.mrf.mxu3  ;;  %1751 = vmatpush.bf16.msrb.mxu1 %v2326_v6 }
 0x2d1   : > { %v1383_v10 = vadd.f32 %v1379_v9, %v1366_v8 }
 0x2d3   : > { %2486 = vtanh.f32 %v1383_v10 }
 0x2d4   : > { %v1364_v12 = vpop.f32.mrf.mxu2  ;;  %1752 = vmatpush.bf16.msrb.mxu1 %v2325_v51 }
 0x2d6   : > { %v1439_v39 = vpop.f32.mrf.mxu1 }
 0x2d8   : > { %v1381_v18 = vpop.f32.mrf.mxu3  ;;  %1753 = vmatpush.bf16.msrb.mxu1 %v2324_v14 }
 0x2d9   : > { %v2487_v11 = vpop.eup %2486 }
 0x2da   : > { %v1385_v13 = vpack.c.bf16 %v2487_v11, %v2485_v59 }
 0x2dc   : > { %1530 = vmatmul.bf16.vlgmr.msra.gmra.mxu2 %v1385_v13  ;;  %1544 = vmatmul.bf16.vlgmr.msra.gmra.mxu3 %v1385_v13 }
 0x2dd   : > { %1754 = vmatpush.bf16.msrb.mxu1 %v2323_v15 }
 0x35f   : > { %v1531_v22 = vpop.f32.mrf.mxu2  ;;  %v1545_v23 = vpop.f32.mrf.mxu3 }
 0x360   : > { %v1532_v24 = vadd.f32 %v1531_v22, %v1423_v16  ;;  %v1546_v27 = vadd.f32 %v1545_v23, %v1437_v20  ;;  %v2478_v16 = vld [vmem:[%s3350_s28] ss:$0 sm:$0xff]  ;;  %s2792_s28 = scalar_lea.hbm %s3352_s27, 4 }
 0x361   : > { %p2794_p3 = scmp.lt.s32.totalorder %s2792_s28, %s2788_s17 }
 0x362   : > { %v1556_v26 = vadd.f32 %v1552_v21, %v1532_v24  ;;  %v1557_v32 = vadd.f32 %v1553_v29, %v1546_v27  ;;  %v2479_v24 = vld [vmem:[%s3351_s21] ss:$0 sm:$0xff] }
 0x363   : > { %p2795_p7 = por %p2794_p3, %p2793_p13 }
 0x364   : > { %v1560_v31 = vmul.f32 0.5, %v1556_v26 }
 0x365   : > { %p2796_p8 = pnand %p2795_p7, %p2791_p6 }
 0x366   : > { %2488 = vtanh.f32 %v1560_v31 }
 0x367   : > { %v1533_v34 = vpop.f32.mrf.mxu2  ;;  %v1547_v35 = vpop.f32.mrf.mxu3  ;;  %2490 = vtanh.f32 %v1557_v32 }
 0x368   : > { %v1534_v37 = vadd.f32 %v1533_v34, %v1425_v33  ;;  %v1548_v41 = vadd.f32 %v1547_v35, %v1439_v39 }
 0x36a   : > { %v1558_v40 = vadd.f32 %v1552_v21, %v1534_v37  ;;  %v1559_v48 = vadd.f32 %v1553_v29, %v1548_v41 }
 0x36c   : > { %v2489_v45 = vpop.eup %2488  ;;  %v1561_v46 = vmul.f32 0.5, %v1558_v40 }
 0x36d   : > { %v1564_v47 = vadd.f32 1.0, %v2489_v45  ;;  %v2491_v53 = vpop.eup %2490 }
 0x36e   : > { %2492 = vtanh.f32 %v1561_v46 }
 0x36f   : > { %v1566_v49 = vmul.f32 0.5, %v1564_v47  ;;  %2494 = vtanh.f32 %v1559_v48 }
 0x371   : > { %v1570_v54 = vmul.f32 %v2491_v53, %v1566_v49 }
 0x373   : > { %v1572_v55 = vrot.slane %v1570_v54, 4 }
 0x374   : > { %v2493_v43 = vpop.eup %2492 }
 0x375   : > { %v1573_v56 = vadd.f32 %v1572_v55, %v1570_v54  ;;  %v1565_v57 = vadd.f32 1.0, %v2493_v43  ;;  %v2495_v60 = vpop.eup %2494 }
 0x377   : > { %v1574_v58 = vrot.slane %v1573_v56, 2  ;;  %v1567_v28 = vmul.f32 0.5, %v1565_v57 }
 0x379   : > { %v1575_v61 = vadd.f32 %v1574_v58, %v1573_v56  ;;  %v1571_v62 = vmul.f32 %v2495_v60, %v1567_v28 }
 0x37b   : > { %v1576_v63 = vrot.slane %v1575_v61, 1  ;;  %v1578_v0 = vrot.slane %v1571_v62, 4 }
 0x37d   : > { %v1579_v1 = vadd.f32 %v1578_v0, %v1571_v62  ;;  %v1577_v3 = vadd.f32 %v1576_v63, %v1575_v61 }
 0x37f   : > { %v1580_v2 = vrot.slane %v1579_v1, 2  ;;  %2496 = vtanh.f32 %v1577_v3 }
 0x381   : > { %v1581_v5 = vadd.f32 %v1580_v2, %v1579_v1 }
 0x383   : > { %v1582_v52 = vrot.slane %v1581_v5, 1 }
 0x385   : > { %v1583_v7 = vadd.f32 %v1582_v52, %v1581_v5  ;;  %v2497_v8 = vpop.eup %2496 }
 0x386   : > { %v1586_v9 = vpack.c.bf16 %v2497_v8, %v2497_v8 }
 0x387   : > { %2498 = vtanh.f32 %v1583_v7 }
 0x388   : > { %v1610_v59 = vunpack.c.l.b16 %v1586_v9 }
 0x38d   : > { %v2499_v10 = vpop.eup %2498 }
 0x38e   : > { %v1587_v12 = vpack.c.bf16 %v2499_v10, %v2499_v10 }
 0x390   : > { %v1611_v18 = vunpack.c.l.b16 %v1587_v12 }
 0x392   : > { %v1613_v11 = vsel %vm1612_vm2, %v1611_v18, %v1610_v59 }
 0x393   : > { %v1614_v13 = vpack.c.b16 %v1613_v11, %v1613_v11 }
 0x395   : > { %1672 = vmatmul.bf16.vlgmr.msrb.gmra.mxu0 %v1614_v13 }
 0x412   : > { %v1673_v19 = vpop.f32.mrf.mxu0 }
 0x413   : > { %v1674_v20 = vadd.f32 %v2478_v16, %v1673_v19 }
 0x415   : > { %2500 = vtanh.f32 %v1674_v20 }
 0x41a   : > { %v1675_v21 = vpop.f32.mrf.mxu0 }
 0x41b   : > { %v2501_v22 = vpop.eup %2500 }
 0x41c   : > { %v1678_v23 = vpack.c.bf16 %v2501_v22, %v2501_v22 }
 0x41e   : > { %1755 = vmatmul.bf16.vlgmr.msrb.gmra.mxu1 %v1678_v23 }
 0x49b   : > { %v1756_v25 = vpop.f32.mrf.mxu1 }
 0x49c   : > { %v1757_v26 = vadd.f32 %v2479_v24, %v1756_v25 }
 0x49e   : > { %2502 = vtanh.f32 %v1757_v26 }
 0x4a3   : > { %v1758_v27 = vpop.f32.mrf.mxu1 }
 0x4a4   : > { %v2503_v29 = vpop.eup %2502 }
 0x4a5   : > { %1761 = vst [vmem:[%s679_s24] sm:$0x3] %v2503_v29 }
 0x4a6   : > { %2799 = shalt.err (!%p2796_p8)
}
 0x4a7   : > { %2376 = dma.vmem_to_hbm [thread:$0]  (%p3013_p11), %s1776_s18, 32, %s1778_s29, %s1763_s25  }
 0x4a8 PF: > { %s3354_s14 = sld [smem:[#allocation31_spill]]  ;;  %p2404_p9 = pnand %p1957_p2, %p3017_p12 }
 0x4aa   : > { %p2405_p10 = pneg %p2404_p9 }
 0x4ae   : > { %s1789_s11 = sand.u32 1, %s3354_s14  }
 0x4af   : > { %s1790_s26 = scalar_lea.sflag [#allocation4], %s1789_s11 }
 0x4b0   : > { %2845 = dma.done.wait (%p2405_p10), %s1790_s26, 32  }
 0x4b1   : > { %2847 = vsyncadd (%p2405_p10), %s1790_s26, 4294967264  ;;  %s3356_s16 = sld [smem:[#allocation32_spill]]  ;;  %s3358_s29 = smov %s2854_s30 }
 0x4b2   : > { %s3357_s5 = sld [smem:[#allocation33_spill]]  ;;  %s3359_s30 = smov %s2858_s15 }
 0x4b7   : > { %p34_p1 = scmp.ge.s32.totalorder %s3356_s16, 4  }
 0x4b8   : > { %s3360_s15 = smov %s3357_s5 }
 0x4b9   :  { %36 = sbr.rel (!%p34_p1) target bundleno = 19 (0x13), region = 176 }
 0x4be   :  { %1796 = vsyncpa [#allocation3], 1 }
 0x4bf   :  { %1798 = vsyncpa [#allocation3 + $0x1], 1 }
 0x4c0   :  { %1799 = vsyncpa [#allocation6], 1 }
 0x4c1   :  { %1801 = vsyncpa [#allocation6 + $0x1], 1 }
 0x4c2   :  { %1802 = vsyncpa [#allocation9], 1 }
 0x4c3   :  { %1803 = vsyncpa [#allocation12], 1 }
 0x4c4   :  { %1804 = vsyncpa [#allocation15], 1 }
 0x4c5   :  { %1805 = vsyncpa [#allocation18], 1 }
 0x4c6   :  { %1806 = vsyncpa [#allocation4], 1 }
 0x4c7   :  { %1808 = vsyncpa [#allocation4 + $0x1], 1 }

</bundles_post_ra>
